<compile_context>
chip_gen: v7x
topology: tpu7x:2x2x1
jax: 0.10.0
libtpu: 0.0.40
codegen_flags: <defaults>
</compile_context>

<pallas_src>
import functools
import math

import jax
import jax.numpy as jnp
from jax.experimental import pallas as pl
from jax.experimental.pallas import tpu as pltpu


def _linear_variational_kernel(prior_mu, prior_sigma,
                               x_ref, w_mu_ref, w_p_ref, eps_w_ref,
                               b_mu_ref, b_p_ref, eps_b_ref,
                               z_ref, kl_ref,
                               acc_ref, kl_acc_ref):
    """One (n, k) grid step.

    x_ref:      (B, TK)   f32   activation tile (k-th slice of In)
    w_mu_ref:   (TK, TN)  f32   weight mean tile, (In, Out) layout
    w_p_ref:    (TK, TN)  f32   weight log-variance tile (sigma = exp(p/2))
    eps_w_ref:  (TK, TN)  f32   standard-normal reparameterization noise
    b_mu_ref:   (1, TN)   f32
    b_p_ref:    (1, TN)   f32
    eps_b_ref:  (1, TN)   f32
    z_ref:      (B, TN)   f32   output tile  (written on the last k step)
    kl_ref:     (8, 128)  f32   per-Out-tile KL partial (written on last k)
    acc_ref:    (B, TN)   f32   VMEM matmul accumulator (scratch)
    kl_acc_ref: (1, 1)    f32   VMEM KL accumulator (scratch)
    """
    k = pl.program_id(1)
    num_k = pl.num_programs(1)
    log_prior_sigma = math.log(prior_sigma)     # Python constants at trace time
    prior_var = prior_sigma * prior_sigma

    @pl.when(k == 0)
    def _init():
        acc_ref[...] = jnp.zeros_like(acc_ref)
        kl_acc_ref[...] = jnp.zeros_like(kl_acc_ref)

    # --- rsample of the weight tile: mu + exp(p/2) * eps.
    #     Single EUP exp; sigma reused below for the KL variance. ---
    w_mu = w_mu_ref[...]
    w_p = w_p_ref[...]
    sigma_w = jnp.exp(0.5 * w_p)
    w = w_mu + sigma_w * eps_w_ref[...]                        # (TK, TN)

    # --- partial matmul (B, TK) @ (TK, TN): MXU-native, f32 accumulation. ---
    acc_ref[...] += jax.lax.dot_general(
        x_ref[...], w,
        dimension_numbers=(((1,), (0,)), ((), ())),
        preferred_element_type=jnp.float32)

    # --- KL( N(prior_mu, prior_sigma) || N(mu_q, sigma_q) ), tile partial.
    # kl = log(sigma_q/sigma_p) + (sigma_p^2 + (mu_p - mu_q)^2)/(2 sigma_q^2) - 1/2
    var_w = sigma_w * sigma_w
    kl_w = jnp.sum(0.5 * w_p - log_prior_sigma
                   + (prior_var + (prior_mu - w_mu) ** 2) / (2.0 * var_w)
                   - 0.5)
    kl_acc_ref[...] += kl_w

    # --- finalize on the last reduction step: bias sample/add + bias KL. ---
    @pl.when(k == num_k - 1)
    def _finalize():
        b_mu = b_mu_ref[...]
        b_p = b_p_ref[...]
        sigma_b = jnp.exp(0.5 * b_p)
        b = b_mu + sigma_b * eps_b_ref[...]                    # (1, TN)
        z_ref[...] = (acc_ref[...] + b).astype(z_ref.dtype)

        var_b = sigma_b * sigma_b
        kl_b = jnp.sum(0.5 * b_p - log_prior_sigma
                       + (prior_var + (prior_mu - b_mu) ** 2) / (2.0 * var_b)
                       - 0.5)
        # Broadcast this Out-tile's total KL over its lane-dense (8,128) block.
        kl_ref[...] = jnp.broadcast_to(kl_acc_ref[...] + kl_b, kl_ref.shape)


def _pick_tile(dim, preferred):
    """Largest multiple of 128 that divides `dim`, capped at `preferred`.
    Falls back to the full dimension (always a legal Pallas block size)."""
    if dim % 128 == 0:
        t = min(preferred, dim)
        t -= t % 128
        while t >= 128:
            if dim % t == 0:
                return t
            t -= 128
    return dim


def linear_variational_forward(x, w_mu, w_p, eps_w, b_mu, b_p, eps_b, *,
                               layer_s=False, tile_n=256, tile_k=512):
    """Pallas wrapper reproducing LinearVariational.forward (bias=True).

    Returns (z, accumulated_kl_div).
    """
    x = jnp.asarray(x, jnp.float32)
    batch, in_features = x.shape
    out_features = w_mu.shape[0]
    assert w_mu.shape == (out_features, in_features)

    # Prior parameters (compile-time constants), matching kl_divergence():
    #   layer_s=False -> N(0, 1),   layer_s=True -> N(-9.305, 4)
    prior_mu = -9.305 if layer_s else 0.0
    prior_sigma = 4.0 if layer_s else 1.0

    tn = _pick_tile(out_features, tile_n)
    tk = _pick_tile(in_features, tile_k)
    num_n = out_features // tn
    num_k = in_features // tk

    # Layout plumbing (not extra compute): (In, Out) layout so the kernel dot
    # never transposes the freshly sampled weight tile through the XLU.
    w_mu_t = jnp.asarray(w_mu, jnp.float32).T
    w_p_t = jnp.asarray(w_p, jnp.float32).T
    eps_w_t = jnp.asarray(eps_w, jnp.float32).T
    b_mu_r = jnp.asarray(b_mu, jnp.float32).reshape(1, out_features)
    b_p_r = jnp.asarray(b_p, jnp.float32).reshape(1, out_features)
    eps_b_r = jnp.asarray(eps_b, jnp.float32).reshape(1, out_features)

    kernel = functools.partial(_linear_variational_kernel,
                               float(prior_mu), float(prior_sigma))

    w_spec = pl.BlockSpec((tk, tn), lambda n, k: (k, n))
    bias_spec = pl.BlockSpec((1, tn), lambda n, k: (0, n))

    z, kl_parts = pl.pallas_call(
        kernel,
        out_shape=(
            jax.ShapeDtypeStruct((batch, out_features), jnp.float32),
            jax.ShapeDtypeStruct((num_n * 8, 128), jnp.float32),
        ),
        grid_spec=pltpu.PrefetchScalarGridSpec(
            num_scalar_prefetch=0,
            grid=(num_n, num_k),                                  # reduction last
            in_specs=[
                pl.BlockSpec((batch, tk), lambda n, k: (0, k)),   # x
                w_spec, w_spec, w_spec,                           # w_mu, w_p, eps_w
                bias_spec, bias_spec, bias_spec,                  # b_mu, b_p, eps_b
            ],
            out_specs=(
                pl.BlockSpec((batch, tn), lambda n, k: (0, n)),   # z
                pl.BlockSpec((8, 128), lambda n, k: (n, 0)),      # KL partials
            ),
            scratch_shapes=[
                pltpu.VMEM((batch, tn), jnp.float32),             # matmul acc
                pltpu.VMEM((1, 1), jnp.float32),                  # KL acc
            ],
        ),
        compiler_params=pltpu.CompilerParams(
            dimension_semantics=("parallel", "arbitrary"),        # Out || on v7x
            vmem_limit_bytes=32 * 1024 * 1024,
        ),
    )(x, w_mu_t, w_p_t, eps_w_t, b_mu_r, b_p_r, eps_b_r)

    # Each Out tile broadcast its KL partial over one (8,128) block; take one
    # representative element per block and reduce to the scalar KL.
    kl = jnp.sum(kl_parts[0::8, 0])
    return z, kl


def _reference_forward(x, w_mu, w_p, eps_w, b_mu, b_p, eps_b, layer_s=False):
    """Pure-JAX reference for correctness checking."""
    prior_mu = -9.305 if layer_s else 0.0
    prior_sigma = 4.0 if layer_s else 1.0
    w = w_mu + jnp.exp(0.5 * w_p) * eps_w
    b = b_mu + jnp.exp(0.5 * b_p) * eps_b
    z = x @ w.T + b

    def kl_sum(mu_q, p_q):
        var_q = jnp.exp(p_q)
        return jnp.sum(0.5 * p_q - jnp.log(prior_sigma)
                       + (prior_sigma ** 2 + (prior_mu - mu_q) ** 2) / (2.0 * var_q)
                       - 0.5)

    kl = kl_sum(w_mu, w_p) + kl_sum(b_mu, b_p)
    return z, kl


if __name__ == "__main__":
    key = jax.random.PRNGKey(0)
    (k_x, k_wmu, k_epsw, k_epsb,
     k_x2, k_wmu2, k_epsw2, k_epsb2) = jax.random.split(key, 8)

    def make_inputs(kx, kw, kew, keb, batch, in_f, out_f):
        # Deterministic parameter init mirroring LinearVariational.__init__
        variance = 2.0 / (out_f + in_f)
        w_mu = (variance ** 0.5) * jax.random.normal(kw, (out_f, in_f), jnp.float32)
        w_p = -5.0 * jnp.ones((out_f, in_f), jnp.float32)
        b_mu = 0.1 * jnp.ones((out_f,), jnp.float32)
        b_p = -10.0 * jnp.ones((out_f,), jnp.float32)
        x = jax.random.normal(kx, (batch, in_f), jnp.float32)
        eps_w = jax.random.normal(kew, (out_f, in_f), jnp.float32)
        eps_b = jax.random.normal(keb, (out_f,), jnp.float32)
        return x, w_mu, w_p, eps_w, b_mu, b_p, eps_b

    # --- Case 1: tile-aligned shapes, 2x2 grid (exercises Out tiling and the
    #     In-reduction accumulator), standard N(0,1) prior. ---
    batch, in_f, out_f = 8, 512, 256
    args = make_inputs(k_x, k_wmu, k_epsw, k_epsb, batch, in_f, out_f)
    z, kl = linear_variational_forward(*args, layer_s=False,
                                       tile_n=128, tile_k=256)
    jax.block_until_ready((z, kl))
    z_ref, kl_ref = _reference_forward(*args, layer_s=False)
    assert z.shape == (batch, out_f)
    assert jnp.allclose(z, z_ref, atol=5e-3, rtol=5e-3), \
        float(jnp.max(jnp.abs(z - z_ref)))
    assert jnp.allclose(kl, kl_ref, rtol=5e-4), (float(kl), float(kl_ref))

    # --- Case 2: small non-128-aligned shapes (full-extent block fallback),
    #     layer_s=True prior N(-9.305, 4). ---
    batch2, in_f2, out_f2 = 4, 32, 16
    args2 = make_inputs(k_x2, k_wmu2, k_epsw2, k_epsb2, batch2, in_f2, out_f2)
    z2, kl2 = linear_variational_forward(*args2, layer_s=True)
    jax.block_until_ready((z2, kl2))
    z2_ref, kl2_ref = _reference_forward(*args2, layer_s=True)
    assert z2.shape == (batch2, out_f2)
    assert jnp.allclose(z2, z2_ref, atol=5e-3, rtol=5e-3), \
        float(jnp.max(jnp.abs(z2 - z2_ref)))
    assert jnp.allclose(kl2, kl2_ref, rtol=5e-4), (float(kl2), float(kl2_ref))

    print("KERNEL_OK")
</pallas_src>

<mosaic_0001>
module attributes {stable_mosaic.version = 11 : i64} {
  func.func @_linear_variational_kernel(%arg0: i32, %arg1: i32, %arg2: memref<8x256xf32, #tpu.memory_space<vmem>>, %arg3: memref<256x128xf32, #tpu.memory_space<vmem>>, %arg4: memref<256x128xf32, #tpu.memory_space<vmem>>, %arg5: memref<256x128xf32, #tpu.memory_space<vmem>>, %arg6: memref<1x128xf32, #tpu.memory_space<vmem>>, %arg7: memref<1x128xf32, #tpu.memory_space<vmem>>, %arg8: memref<1x128xf32, #tpu.memory_space<vmem>>, %arg9: memref<8x128xf32, #tpu.memory_space<vmem>>, %arg10: memref<8x128xf32, #tpu.memory_space<vmem>>, %arg11: memref<8x128xf32, #tpu.memory_space<vmem>>, %arg12: memref<1x1xf32, #tpu.memory_space<vmem>>) attributes {dimension_semantics = [#tpu.dimension_semantics<parallel>, #tpu.dimension_semantics<arbitrary>], iteration_bounds = array<i64: 2, 2>, scalar_prefetch = 0 : i64, scratch_operands = 2 : i64, tpu.core_type = #tpu.core_type<tc>, window_params = [{transform_indices = @transform_0, window_bounds = array<i64: 8, 256>}, {transform_indices = @transform_1, window_bounds = array<i64: 256, 128>}, {transform_indices = @transform_2, window_bounds = array<i64: 256, 128>}, {transform_indices = @transform_3, window_bounds = array<i64: 256, 128>}, {transform_indices = @transform_4, window_bounds = array<i64: 1, 128>}, {transform_indices = @transform_5, window_bounds = array<i64: 1, 128>}, {transform_indices = @transform_6, window_bounds = array<i64: 1, 128>}, {transform_indices = @transform_7, window_bounds = array<i64: 8, 128>}, {transform_indices = @transform_8, window_bounds = array<i64: 8, 128>}]} {
    %c0_i32 = arith.constant 0 : i32
    %0 = arith.cmpi eq, %arg1, %c0_i32 : i32
    %1 = arith.extui %0 : i1 to i32
    %c0_i32_0 = arith.constant 0 : i32
    %2 = arith.cmpi ne, %1, %c0_i32_0 : i32
    scf.if %2 {
      %cst_25 = arith.constant 0.000000e+00 : f32
      %43 = vector.broadcast %cst_25 : f32 to vector<8x128xf32>
      %c0_26 = arith.constant 0 : index
      %c0_27 = arith.constant 0 : index
      %44 = vector.load %arg11[%c0_26, %c0_27] : memref<8x128xf32, #tpu.memory_space<vmem>>, vector<8x128xf32>
      tpu.vector_store %arg11[%c0_26, %c0_27], %43 {strides = array<i32>} : memref<8x128xf32, #tpu.memory_space<vmem>>, vector<8x128xf32>,
      %cst_28 = arith.constant 0.000000e+00 : f32
      %45 = vector.broadcast %cst_28 : f32 to vector<1x1xf32>
      %c0_29 = arith.constant 0 : index
      %c0_30 = arith.constant 0 : index
      %46 = vector.load %arg12[%c0_29, %c0_30] : memref<1x1xf32, #tpu.memory_space<vmem>>, vector<1x1xf32>
      tpu.vector_store %arg12[%c0_29, %c0_30], %45 {strides = array<i32>} : memref<1x1xf32, #tpu.memory_space<vmem>>, vector<1x1xf32>,
    } else {
    }
    %c0 = arith.constant 0 : index
    %c0_1 = arith.constant 0 : index
    %3 = vector.load %arg3[%c0, %c0_1] : memref<256x128xf32, #tpu.memory_space<vmem>>, vector<256x128xf32>
    %c0_2 = arith.constant 0 : index
    %c0_3 = arith.constant 0 : index
    %4 = vector.load %arg4[%c0_2, %c0_3] : memref<256x128xf32, #tpu.memory_space<vmem>>, vector<256x128xf32>
    %cst = arith.constant 5.000000e-01 : f32
    %5 = vector.broadcast %cst : f32 to vector<256x128xf32>
    %6 = arith.mulf %5, %4 : vector<256x128xf32>
    %7 = math.exp %6 : vector<256x128xf32>
    %c0_4 = arith.constant 0 : index
    %c0_5 = arith.constant 0 : index
    %8 = vector.load %arg5[%c0_4, %c0_5] : memref<256x128xf32, #tpu.memory_space<vmem>>, vector<256x128xf32>
    %9 = arith.mulf %7, %8 : vector<256x128xf32>
    %10 = arith.addf %3, %9 : vector<256x128xf32>
    %c0_6 = arith.constant 0 : index
    %c0_7 = arith.constant 0 : index
    %11 = vector.load %arg11[%c0_6, %c0_7] : memref<8x128xf32, #tpu.memory_space<vmem>>, vector<8x128xf32>
    %c0_8 = arith.constant 0 : index
    %c0_9 = arith.constant 0 : index
    %12 = vector.load %arg2[%c0_8, %c0_9] : memref<8x256xf32, #tpu.memory_space<vmem>>, vector<8x256xf32>
    %cst_10 = arith.constant dense<0.000000e+00> : vector<8x128xf32>
    %13 = tpu.matmul %12, %10, %cst_10 {dimension_numbers = #tpu.dot_dimension_numbers<[1], [0], [0], [1], [0, 0, 1, 1], [], []>} : vector<8x256xf32>, vector<256x128xf32>, vector<8x128xf32> -> vector<8x128xf32>
    %14 = arith.addf %11, %13 : vector<8x128xf32>
    %c0_11 = arith.constant 0 : index
    %c0_12 = arith.constant 0 : index
    %15 = vector.load %arg11[%c0_11, %c0_12] : memref<8x128xf32, #tpu.memory_space<vmem>>, vector<8x128xf32>
    tpu.vector_store %arg11[%c0_11, %c0_12], %14 {strides = array<i32>} : memref<8x128xf32, #tpu.memory_space<vmem>>, vector<8x128xf32>,
    %16 = arith.mulf %7, %7 : vector<256x128xf32>
    %cst_13 = arith.constant 5.000000e-01 : f32
    %17 = vector.broadcast %cst_13 : f32 to vector<256x128xf32>
    %18 = arith.mulf %17, %4 : vector<256x128xf32>
    %cst_14 = arith.constant 0.000000e+00 : f32
    %19 = vector.broadcast %cst_14 : f32 to vector<256x128xf32>
    %20 = arith.subf %18, %19 : vector<256x128xf32>
    %cst_15 = arith.constant 0.000000e+00 : f32
    %21 = vector.broadcast %cst_15 : f32 to vector<256x128xf32>
    %22 = arith.subf %21, %3 : vector<256x128xf32>
    %23 = arith.mulf %22, %22 : vector<256x128xf32>
    %cst_16 = arith.constant 1.000000e+00 : f32
    %24 = vector.broadcast %cst_16 : f32 to vector<256x128xf32>
    %25 = arith.addf %24, %23 : vector<256x128xf32>
    %cst_17 = arith.constant 2.000000e+00 : f32
    %26 = vector.broadcast %cst_17 : f32 to vector<256x128xf32>
    %27 = arith.mulf %26, %16 : vector<256x128xf32>
    %28 = arith.divf %25, %27 : vector<256x128xf32>
    %29 = arith.addf %20, %28 : vector<256x128xf32>
    %cst_18 = arith.constant 5.000000e-01 : f32
    %30 = vector.broadcast %cst_18 : f32 to vector<256x128xf32>
    %31 = arith.subf %29, %30 : vector<256x128xf32>
    %32 = vector.shape_cast %31 : vector<256x128xf32> to vector<1x256x128xf32>
    %cst_19 = arith.constant dense<0.000000e+00> : vector<1xf32>
    %33 = vector.multi_reduction <add>, %32, %cst_19 [1, 2] : vector<1x256x128xf32> to vector<1xf32>
    %34 = vector.shape_cast %33 : vector<1xf32> to vector<1x1x1xf32>
    %35 = vector.extract %34[0, 0, 0] : f32 from vector<1x1x1xf32>
    %c0_20 = arith.constant 0 : index
    %c0_21 = arith.constant 0 : index
    %36 = vector.load %arg12[%c0_20, %c0_21] : memref<1x1xf32, #tpu.memory_space<vmem>>, vector<1x1xf32>
    %37 = vector.broadcast %35 : f32 to vector<1x1xf32>
    %38 = arith.addf %36, %37 : vector<1x1xf32>
    %c0_22 = arith.constant 0 : index
    %c0_23 = arith.constant 0 : index
    %39 = vector.load %arg12[%c0_22, %c0_23] : memref<1x1xf32, #tpu.memory_space<vmem>>, vector<1x1xf32>
    tpu.vector_store %arg12[%c0_22, %c0_23], %38 {strides = array<i32>} : memref<1x1xf32, #tpu.memory_space<vmem>>, vector<1x1xf32>,
    %c1_i32 = arith.constant 1 : i32
    %40 = arith.cmpi eq, %arg1, %c1_i32 : i32
    %41 = arith.extui %40 : i1 to i32
    %c0_i32_24 = arith.constant 0 : i32
    %42 = arith.cmpi ne, %41, %c0_i32_24 : i32
    scf.if %42 {
      %c0_25 = arith.constant 0 : index
      %c0_26 = arith.constant 0 : index
      %43 = vector.load %arg6[%c0_25, %c0_26] : memref<1x128xf32, #tpu.memory_space<vmem>>, vector<1x128xf32>
      %c0_27 = arith.constant 0 : index
      %c0_28 = arith.constant 0 : index
      %44 = vector.load %arg7[%c0_27, %c0_28] : memref<1x128xf32, #tpu.memory_space<vmem>>, vector<1x128xf32>
      %cst_29 = arith.constant 5.000000e-01 : f32
      %45 = vector.broadcast %cst_29 : f32 to vector<1x128xf32>
      %46 = arith.mulf %45, %44 : vector<1x128xf32>
      %47 = math.exp %46 : vector<1x128xf32>
      %c0_30 = arith.constant 0 : index
      %c0_31 = arith.constant 0 : index
      %48 = vector.load %arg8[%c0_30, %c0_31] : memref<1x128xf32, #tpu.memory_space<vmem>>, vector<1x128xf32>
      %49 = arith.mulf %47, %48 : vector<1x128xf32>
      %50 = arith.addf %43, %49 : vector<1x128xf32>
      %c0_32 = arith.constant 0 : index
      %c0_33 = arith.constant 0 : index
      %51 = vector.load %arg11[%c0_32, %c0_33] : memref<8x128xf32, #tpu.memory_space<vmem>>, vector<8x128xf32>
      %52 = vector.broadcast %50 : vector<1x128xf32> to vector<8x128xf32>
      %53 = arith.addf %51, %52 : vector<8x128xf32>
      %c0_34 = arith.constant 0 : index
      %c0_35 = arith.constant 0 : index
      %54 = vector.load %arg9[%c0_34, %c0_35] : memref<8x128xf32, #tpu.memory_space<vmem>>, vector<8x128xf32>
      tpu.vector_store %arg9[%c0_34, %c0_35], %53 {strides = array<i32>} : memref<8x128xf32, #tpu.memory_space<vmem>>, vector<8x128xf32>,
      %55 = arith.mulf %47, %47 : vector<1x128xf32>
      %cst_36 = arith.constant 5.000000e-01 : f32
      %56 = vector.broadcast %cst_36 : f32 to vector<1x128xf32>
      %57 = arith.mulf %56, %44 : vector<1x128xf32>
      %cst_37 = arith.constant 0.000000e+00 : f32
      %58 = vector.broadcast %cst_37 : f32 to vector<1x128xf32>
      %59 = arith.subf %57, %58 : vector<1x128xf32>
      %cst_38 = arith.constant 0.000000e+00 : f32
      %60 = vector.broadcast %cst_38 : f32 to vector<1x128xf32>
      %61 = arith.subf %60, %43 : vector<1x128xf32>
      %62 = arith.mulf %61, %61 : vector<1x128xf32>
      %cst_39 = arith.constant 1.000000e+00 : f32
      %63 = vector.broadcast %cst_39 : f32 to vector<1x128xf32>
      %64 = arith.addf %63, %62 : vector<1x128xf32>
      %cst_40 = arith.constant 2.000000e+00 : f32
      %65 = vector.broadcast %cst_40 : f32 to vector<1x128xf32>
      %66 = arith.mulf %65, %55 : vector<1x128xf32>
      %67 = arith.divf %64, %66 : vector<1x128xf32>
      %68 = arith.addf %59, %67 : vector<1x128xf32>
      %cst_41 = arith.constant 5.000000e-01 : f32
      %69 = vector.broadcast %cst_41 : f32 to vector<1x128xf32>
      %70 = arith.subf %68, %69 : vector<1x128xf32>
      %71 = vector.shape_cast %70 : vector<1x128xf32> to vector<1x1x128xf32>
      %cst_42 = arith.constant dense<0.000000e+00> : vector<1xf32>
      %72 = vector.multi_reduction <add>, %71, %cst_42 [1, 2] : vector<1x1x128xf32> to vector<1xf32>
      %73 = vector.shape_cast %72 : vector<1xf32> to vector<1x1x1xf32>
      %74 = vector.extract %73[0, 0, 0] : f32 from vector<1x1x1xf32>
      %c0_43 = arith.constant 0 : index
      %c0_44 = arith.constant 0 : index
      %75 = vector.load %arg12[%c0_43, %c0_44] : memref<1x1xf32, #tpu.memory_space<vmem>>, vector<1x1xf32>
      %76 = vector.broadcast %74 : f32 to vector<1x1xf32>
      %77 = arith.addf %75, %76 : vector<1x1xf32>
      %78 = vector.shape_cast %77 : vector<1x1xf32> to vector<1x1xf32>
      %79 = vector.broadcast %78 : vector<1x1xf32> to vector<8x128xf32>
      %c0_45 = arith.constant 0 : index
      %c0_46 = arith.constant 0 : index
      %80 = vector.load %arg10[%c0_45, %c0_46] : memref<8x128xf32, #tpu.memory_space<vmem>>, vector<8x128xf32>
      tpu.vector_store %arg10[%c0_45, %c0_46], %79 {strides = array<i32>} : memref<8x128xf32, #tpu.memory_space<vmem>>, vector<8x128xf32>,
    } else {
    }
    return
  }
  func.func @transform_0(%arg0: i32, %arg1: i32) -> (i32, i32) {
    %c0_i32 = arith.constant 0 : i32
    %c0_i32_0 = arith.constant 0 : i32
    return %c0_i32, %arg1 : i32, i32
  }
  func.func @transform_1(%arg0: i32, %arg1: i32) -> (i32, i32) {
    %c0_i32 = arith.constant 0 : i32
    return %arg1, %arg0 : i32, i32
  }
  func.func @transform_2(%arg0: i32, %arg1: i32) -> (i32, i32) {
    %c0_i32 = arith.constant 0 : i32
    return %arg1, %arg0 : i32, i32
  }
  func.func @transform_3(%arg0: i32, %arg1: i32) -> (i32, i32) {
    %c0_i32 = arith.constant 0 : i32
    return %arg1, %arg0 : i32, i32
  }
  func.func @transform_4(%arg0: i32, %arg1: i32) -> (i32, i32) {
    %c0_i32 = arith.constant 0 : i32
    %c0_i32_0 = arith.constant 0 : i32
    return %c0_i32, %arg0 : i32, i32
  }
  func.func @transform_5(%arg0: i32, %arg1: i32) -> (i32, i32) {
    %c0_i32 = arith.constant 0 : i32
    %c0_i32_0 = arith.constant 0 : i32
    return %c0_i32, %arg0 : i32, i32
  }
  func.func @transform_6(%arg0: i32, %arg1: i32) -> (i32, i32) {
    %c0_i32 = arith.constant 0 : i32
    %c0_i32_0 = arith.constant 0 : i32
    return %c0_i32, %arg0 : i32, i32
  }
  func.func @transform_7(%arg0: i32, %arg1: i32) -> (i32, i32) {
    %c0_i32 = arith.constant 0 : i32
    %c0_i32_0 = arith.constant 0 : i32
    return %c0_i32, %arg0 : i32, i32
  }
  func.func @transform_8(%arg0: i32, %arg1: i32) -> (i32, i32) {
    %c0_i32 = arith.constant 0 : i32
    %c0_i32_0 = arith.constant 0 : i32
    return %arg0, %c0_i32 : i32, i32
  }
}

</mosaic_0001>

<bundles_post_ra>
// kernel: tpu_custom_call.1
= control target key start
LH: loop header
LB: loop body
LE: loop exit
PB: predicated region body
PF: predicated region fallthrough
CT: control target
= control target key end

     0   :  { %s3159_s0 = inlined_call_operand.hbm [shape: f32[8,512], index: 0, kind: input, shape index: {}]   ;;  %s3160_s1 = inlined_call_operand.hbm [shape: f32[512,256], index: 1, kind: input, shape index: {}]   ;;  %s3161_s2 = inlined_call_operand.hbm [shape: f32[512,256], index: 2, kind: input, shape index: {}]   ;;  %s3162_s3 = inlined_call_operand.hbm [shape: f32[512,256], index: 3, kind: input, shape index: {}]   ;;  %s3163_s4 = inlined_call_operand.vmem [shape: f32[1,256], index: 4, kind: input, shape index: {}]   ;;  %s3164_s5 = inlined_call_operand.vmem [shape: f32[1,256], index: 5, kind: input, shape index: {}]   ;;  %s3165_s6 = inlined_call_operand.vmem [shape: f32[1,256], index: 6, kind: input, shape index: {}]   ;;  %s3166_s7 = inlined_call_operand.hbm [shape: f32[8,256], index: 7, kind: output, shape index: {0}]   ;;  %s3167_s8 = inlined_call_operand.hbm [shape: f32[16,128], index: 8, kind: output, shape index: {1}]  }
   0x1   :  { %3196 = sst [smem:[#allocation34_spill]] %s3160_s1 }
   0x2   :  { %3197 = sst [smem:[#allocation35_spill]] %s3163_s4 }
   0x3   :  { %3198 = sst [smem:[#allocation36_spill]] %s3164_s5 }
   0x4   :  { %3199 = sst [smem:[#allocation37_spill]] %s3165_s6 }
   0x5   :  { %3200 = sst [smem:[#allocation38_spill]] %s3166_s7 }
   0x6   :  { %3201 = sst [smem:[#allocation39_spill]] %s3167_s8 }
   0x7   :  { %14 = vsyncpa [#allocation5], 0 }
   0x8   :  { %16 = vsyncpa [#allocation5 + $0x1], 0 }
   0x9   :  { %17 = vsyncpa [#allocation8], 0 }
   0xa   :  { %19 = vsyncpa [#allocation8 + $0x1], 0 }
   0xb   :  { %20 = vsyncpa [#allocation11], 0 }
   0xc   :  { %22 = vsyncpa [#allocation11 + $0x1], 0 }
   0xd   :  { %23 = vsyncpa [#allocation6], 0 }
   0xe   :  { %25 = vsyncpa [#allocation6 + $0x1], 0 }
   0xf   :  { %26 = vsyncpa [#allocation14], 0 }
  0x10   :  { %28 = vsyncpa [#allocation14 + $0x1], 0  ;;  %s2279_s27 = smov 0   ;;  %s2281_s28 = smov 0  }
  0x11   :  { %s2283_s29 = smov 0   ;;  %s2285_s30 = smov 0  }
  0x12   :  { %s2287_s9 = smov 0   ;;  %s2289_s10 = smov 0  }
  0x13   :  { %s2291_s11 = smov 0   ;;  %s2293_s12 = smov 0  }
  0x14   :  { %s2295_s13 = smov 0   ;;  %s2297_s14 = smov 0  }
  0x15   :  { %s2299_s15 = smov 0   ;;  %s2301_s16 = smov 0  }
  0x16   :  { %s2303_s17 = smov 0   ;;  %s2305_s18 = smov 0  }
  0x17 LB: > { %3202 = sst [smem:[#allocation20_spill]] %s2177_s29  ;;  %p3172_p0 = scmp.eq.s32.totalorder %s2221_s18, 0  ;;  %s2221_s18 = sphi %s2305_s18, %s34_s18   ;;  %s2217_s17 = sphi %s2303_s17, %s3270_s17   ;;  %s2213_s16 = sphi %s2301_s16, %s3269_s16   ;;  %s2209_s15 = sphi %s2299_s15, %s3276_s15   ;;  %s2205_s14 = sphi %s2297_s14, %s3267_s14   ;;  %s2201_s13 = sphi %s2295_s13, %s3266_s13   ;;  %s2197_s12 = sphi %s2293_s12, %s3275_s12   ;;  %s2193_s11 = sphi %s2291_s11, %s3264_s11   ;;  %s2189_s10 = sphi %s2289_s10, %s3274_s10   ;;  %s2185_s9 = sphi %s2287_s9, %s3273_s9   ;;  %s2181_s30 = sphi %s2285_s30, %s3262_s30   ;;  %s2177_s29 = sphi %s2283_s29, %s3261_s29   ;;  %s2173_s28 = sphi %s2281_s28, %s3272_s28   ;;  %s2169_s27 = sphi %s2279_s27, %s3271_s27  }
  0x18   : > { %3203 = sst [smem:[#allocation21_spill]] %s2185_s9  ;;  %p88_p1 = scmp.ne.s32.totalorder %s2189_s10, %s2185_s9 }
  0x19   : > { %3204 = sst [smem:[#allocation22_spill]] %s2197_s12  ;;  %p3171_p2 = scmp.lt.s32.totalorder %s2221_s18, 4 }
  0x1a   : > { %3205 = sst [smem:[#allocation23_spill]] %s2201_s13  ;;  %p90_p3 = por %p88_p1, %p3172_p0 }
  0x1b   : > { %3206 = sst [smem:[#allocation24_spill]] %s2205_s14  ;;  %s323_s21 = sand.u32 1, %s2221_s18  }
  0x1c   : > { %3207 = sst [smem:[#allocation25_spill]] %s2209_s15  ;;  %s3170_s22 = sand.u32 1, %s2189_s10  }
  0x1d   : > { %3208 = sst [smem:[#allocation26_spill]] %s2213_s16  ;;  %s2361_s23 = sshll.u32 %s3170_s22, 8 }
  0x1e   : > { %3209 = sst [smem:[#allocation27_spill]] %s2217_s17  ;;  %s1557_s24 = sshll.u32 %s2213_s16, 6 }
  0x1f   : > { %s333_s25 = sadd.s32 %s2217_s17, %s1557_s24  ;;  %s327_s19 = scalar_lea.vmem [#allocation7], %s2361_s23 }
  0x20   : > { %s2365_s26 = sshll.u32 %s333_s25, 7  ;;  %s336_s8 = sshll.u32 %s327_s19, 4  ;;  %s2374_s8 = int_to_ptr.vmem [resolvable:$true] %s336_s8 }
  0x21   : > { %s3210_s1 = sld [smem:[#allocation34_spill]]  ;;  %p2378_p4 = pnand %p3171_p2, %p90_p3 }
  0x22   : > { %s2383_s24 = scalar_lea.sflag [#allocation8], %s323_s21 }
  0x23   : > { %s3211_s22 = scalar_select %p2378_p4, 1, 0 }
  0x24   : > { %p2389_p7 = pneg %p2378_p4 }
  0x27   : > { %s2372_s20 = scalar_lea.hbm %s3210_s1, %s2365_s26  ;;  %s1920_s6 = scalar_lea.hbm %s3210_s1, 16384 }
  0x28   : > { %s1915_s19 = scalar_lea.hbm %s2372_s20, 4096  ;;  %p1921_p10 = scmp.lt.u32.totalorder %s2372_s20, %s3210_s1 }
  0x29   : > { %p1916_p6 = scmp.ne.s32.totalorder %s2372_s20, %s1915_s19  ;;  %p1922_p11 = scmp.lt.u32.totalorder %s1920_s6, %s1915_s19 }
  0x2a   : > { %p1924_p13 = scmp.lt.u32.totalorder %s1915_s19, %s2372_s20 }
  0x2b   : > { %p1918_p8 = pnand %p2389_p7, %p1916_p6  ;;  %p1923_p12 = por %p1922_p11, %p1921_p10 }
  0x2d   : > { %p1919_p9 = pneg %p1918_p8  ;;  %p1925_p1 = por %p1924_p13, %p1923_p12 }
  0x2f   : > { %p1926_p3 = pnand %p1925_p1, %p1919_p9 }
  0x31   : > { %1929 = shalt.err (!%p1926_p3)
}
  0x32   : > { %s1930_s21 = scalar_lea.vmem %s2374_s8, 4096  ;;  %s2223_s14 = smov [#allocation7]  }
  0x33   : > { %p1931_p6 = scmp.ne.s32.totalorder %s2374_s8, %s1930_s21  ;;  %s1935_s25 = sshll.u32 %s2223_s14, 4  ;;  %s1936_s25 = int_to_ptr.vmem [resolvable:$false] %s1935_s25 }
  0x34   : > { %s1937_s4 = scalar_lea.vmem %s1936_s25, 8192  ;;  %p1938_p0 = scmp.lt.s32.totalorder %s2374_s8, %s1936_s25 }
  0x35   : > { %p1933_p8 = pnand %p1931_p6, %p2389_p7  ;;  %p1939_p5 = scmp.lt.s32.totalorder %s1937_s4, %s1930_s21 }
  0x37   : > { %p1934_p2 = pneg %p1933_p8  ;;  %p1940_p10 = por %p1939_p5, %p1938_p0 }
  0x39   : > { %p1941_p11 = pnand %p1940_p10, %p1934_p2 }
  0x3b   : > { %1944 = shalt.err (!%p1941_p11)
}
  0x3c   : > { %s3173_s5 = smov 256   ;;  %s3175_s6 = smov 128  }
  0x3d   : > { %s3177_s19 = smov 8   ;;  %p408_p0 = scmp.lt.s32.totalorder %s2221_s18, 5 }
  0x3e   : > { %1649 = dma.hbm_to_vmem [thread:$0]  (!%p2378_p4), %s2372_s20, 4096, %s2374_s8, %s2383_s24, %s3173_s5, %s3175_s6, %s3177_s19  }
  0x3f   : > { %p3213_p2 = scmp.ge.s32.totalorder %s2221_s18, 1  ;;  %s2424_s14 = sadd.s32 4294967295, %s2221_s18  }
  0x40   : > { %s1490_s25 = sadd.s32 4294967294, %s2221_s18   ;;  %s43_s4 = sadd.s32 1, %s2213_s16 }
  0x41   : > { %p2419_p5 = pnand %p3213_p2, %p408_p0  ;;  %s53_s1 = sadd.s32 1, %s2201_s13 }
  0x42   : > { %p44_p9 = scmp.ge.s32.totalorder %s43_s4, 2  ;;  %p60_p12 = scmp.ne.s32.totalorder %s2201_s13, %s2197_s12 }
  0x43   : > { %s3214_s21 = scalar_select %p2419_p5, 1, 0 }
  0x44   : > { %p66_p13 = scmp.ne.s32.totalorder %s2197_s12, %s2193_s11  ;;  %p67_p1 = scmp.eq.s32.totalorder %s2424_s14, 0 }
  0x45   : > { %s3278_s4 = smov (%p44_p9, %s43_s4), 0  ;;  %s3216_s8 = sadd.s32 1, %s2217_s17 }
  0x46   : > { %3215 = sst [smem:[#allocation28_spill]] %s3278_s4  ;;  %s3280_s8 = smov (!%p44_p9, %s3216_s8), %s2217_s17 }
  0x47   : > { %s50_s20 = ssub.s32 %s2213_s16, %s3278_s4  ;;  %p3217_p3 = scmp.eq.s32.totalorder %s2221_s18, 0 }
  0x48   : > { %p48_p8 = scmp.ge.s32.totalorder %s3280_s8, 2  ;;  %p51_p10 = scmp.eq.s32.totalorder %s50_s20, 0 }
  0x49   : > { %p2443_p6 = por %p3217_p3, %p60_p12  ;;  %p2447_p11 = por %p67_p1, %p66_p13 }
  0x4a   : > { %p94_p0 = scmp.ne.s32.totalorder %s2185_s9, %s2181_s30  ;;  %s3282_s8 = smov (%p48_p8, %s3280_s8), 0 }
  0x4b   : > { %s3219_s11 = scalar_select %p2447_p11, 1, 0 }
  0x4c   : > { %3221 = sst [smem:[#allocation30_spill]] %s3282_s8  ;;  %s77_s19 = ssub.s32 %s2217_s17, %s3282_s8 }
  0x4d   : > { %3220 = sst [smem:[#allocation29_spill]] %s3219_s11  ;;  %p2460_p2 = por %p94_p0, %p67_p1 }
  0x4e   : > { %s2456_s6 = scalar_select %p51_p10, %s2201_s13, %s53_s1  }
  0x4f   : > { %s3223_s4 = scalar_select %p2460_p2, 1, 0 }
  0x50   : > { %3222 = sst [smem:[#allocation31_spill]] %s2456_s6  ;;  %s78_s15 = sor.u32 %s77_s19, %s50_s20 }
  0x51   : > { %p239_p9 = scmp.eq.s32.totalorder %s77_s19, 0  ;;  %p79_p12 = scmp.eq.s32.totalorder %s78_s15, 0 }
  0x52   : > { %s241_s12 = sadd.s32 1, %s2177_s29  ;;  %s3225_s30 = sadd.s32 1, %s2189_s10 }
  0x53   : > { %s2466_s11 = scalar_select %p239_p9, %s2177_s29, %s241_s12  }
  0x54   : > { %s2471_s9 = scalar_select %p79_p12, %s2189_s10, %s3225_s30  }
  0x55   : > { %3224 = sst [smem:[#allocation32_spill]] %s2466_s11  ;;  %p251_p13 = scmp.ne.s32.totalorder %s2177_s29, %s2173_s28 }
  0x56   : > { %3226 = sst [smem:[#allocation33_spill]] %s2471_s9  ;;  %p252_p3 = scmp.eq.s32.totalorder %s2424_s14, 3 }
  0x57   : > { %p257_p8 = scmp.ne.s32.totalorder %s2173_s28, %s2169_s27  ;;  %p258_p10 = scmp.eq.s32.totalorder %s1490_s25, 3 }
  0x58   : > { %p2478_p1 = por %p252_p3, %p251_p13  ;;  %s304_s20 = sand.u32 1, %s2201_s13  }
  0x59   : > { %p2483_p0 = por %p258_p10, %p257_p8  ;;  %s1493_s19 = sshll.u32 %s304_s20, 4 }
  0x5a   : > { %s3227_s1 = scalar_select %p2478_p1, 1, 0 }
  0x5b   : > { %s3228_s15 = scalar_select %p2483_p0, 1, 0 }
  0x5c   : > { %s1556_s12 = sshll.u32 %s2213_s16, 8  ;;  %s308_s25 = scalar_lea.vmem [#allocation4], %s1493_s19 }
  0x5d   : > { %s2491_s30 = scalar_lea.hbm %s3159_s0, %s1556_s12  ;;  %s316_s6 = sshll.u32 %s308_s25, 4  ;;  %s2501_s6 = int_to_ptr.vmem [resolvable:$true] %s316_s6 }
  0x5e   : > { %p3229_p9 = scmp.lt.s32.totalorder %s2221_s18, 4  ;;  %s2507_s8 = scalar_lea.hbm %s3161_s2, %s2365_s26 }
  0x5f   : > { %s305_s12 = scalar_lea.sflag [#allocation5], %s304_s20  ;;  %s1945_s9 = scalar_lea.hbm %s2491_s30, 256 }
  0x60   : > { %p2497_p12 = pnand %p3229_p9, %p2443_p6  ;;  %p1946_p13 = scmp.ne.s32.totalorder %s2491_s30, %s1945_s9 }
  0x61   : > { %s1950_s25 = scalar_lea.hbm %s3159_s0, 512  ;;  %p1951_p10 = scmp.lt.u32.totalorder %s2491_s30, %s3159_s0 }
  0x62   : > { %p1947_p3 = pneg %p2497_p12  ;;  %p1952_p9 = scmp.lt.u32.totalorder %s1950_s25, %s1945_s9 }
  0x63   : > { %p1954_p1 = scmp.lt.u32.totalorder %s1945_s9, %s2491_s30 }
  0x64   : > { %p1948_p6 = pnand %p1947_p3, %p1946_p13  ;;  %p1953_p0 = por %p1952_p9, %p1951_p10 }
  0x66   : > { %p1949_p8 = pneg %p1948_p6  ;;  %p1955_p2 = por %p1954_p1, %p1953_p0 }
  0x68   : > { %p1956_p11 = pnand %p1955_p2, %p1949_p8 }
  0x6a   : > { %1959 = shalt.err (!%p1956_p11)
}
  0x6b   : > { %s1960_s16 = scalar_lea.vmem %s2501_s6, 256  ;;  %s2227_s20 = smov [#allocation4]  }
  0x6c   : > { %p1961_p13 = scmp.ne.s32.totalorder %s2501_s6, %s1960_s16  ;;  %s1965_s17 = sshll.u32 %s2227_s20, 4  ;;  %s1966_s17 = int_to_ptr.vmem [resolvable:$false] %s1965_s17 }
  0x6d   : > { %s1967_s29 = scalar_lea.vmem %s1966_s17, 512  ;;  %p1968_p4 = scmp.lt.s32.totalorder %s2501_s6, %s1966_s17 }
  0x6e   : > { %p1963_p6 = pnand %p1961_p13, %p1947_p3  ;;  %p1969_p10 = scmp.lt.s32.totalorder %s1967_s29, %s1960_s16 }
  0x70   : > { %p1964_p5 = pneg %p1963_p6  ;;  %p1970_p9 = por %p1969_p10, %p1968_p4 }
  0x72   : > { %p1971_p1 = pnand %p1970_p9, %p1964_p5 }
  0x74   : > { %1974 = shalt.err (!%p1971_p1)
}
  0x75   : > { %1646 = dma.hbm_to_vmem [thread:$0]  (!%p2497_p12), %s2491_s30, 256, %s2501_s6, %s305_s12  }
  0x76   : > { %s350_s9 = scalar_lea.vmem [#allocation9], %s2361_s23  ;;  %s1975_s5 = scalar_lea.hbm %s2507_s8, 4096 }
  0x77   : > { %s359_s11 = sshll.u32 %s350_s9, 4  ;;  %p1976_p11 = scmp.ne.s32.totalorder %s2507_s8, %s1975_s5  ;;  %s2535_s11 = int_to_ptr.vmem [resolvable:$true] %s359_s11 }
  0x78   : > { %s1980_s25 = scalar_lea.hbm %s3161_s2, 16384  ;;  %p1981_p2 = scmp.lt.u32.totalorder %s2507_s8, %s3161_s2 }
  0x79   : > { %p1978_p4 = pnand %p1976_p11, %p2389_p7  ;;  %p1982_p0 = scmp.lt.u32.totalorder %s1980_s25, %s1975_s5 }
  0x7a   : > { %p1984_p12 = scmp.lt.u32.totalorder %s1975_s5, %s2507_s8 }
  0x7b   : > { %p1979_p5 = pneg %p1978_p4  ;;  %p1983_p3 = por %p1982_p0, %p1981_p2 }
  0x7d   : > { %p1985_p8 = por %p1984_p12, %p1983_p3 }
  0x7f   : > { %p1986_p13 = pnand %p1985_p8, %p1979_p5 }
  0x81   : > { %1989 = shalt.err (!%p1986_p13)
}
  0x82   : > { %s1990_s6 = scalar_lea.vmem %s2535_s11, 4096  ;;  %s2228_s30 = smov [#allocation9]  }
  0x83   : > { %p1991_p6 = scmp.ne.s32.totalorder %s2535_s11, %s1990_s6  ;;  %s1995_s12 = sshll.u32 %s2228_s30, 4  ;;  %s1996_s12 = int_to_ptr.vmem [resolvable:$false] %s1995_s12 }
  0x84   : > { %s1997_s17 = scalar_lea.vmem %s1996_s12, 8192  ;;  %p1998_p1 = scmp.lt.s32.totalorder %s2535_s11, %s1996_s12 }
  0x85   : > { %p1993_p10 = pnand %p1991_p6, %p2389_p7  ;;  %p1999_p11 = scmp.lt.s32.totalorder %s1997_s17, %s1990_s6 }
  0x87   : > { %p1994_p9 = pneg %p1993_p10  ;;  %p2000_p4 = por %p1999_p11, %p1998_p1 }
  0x89   : > { %p2001_p2 = pnand %p2000_p4, %p1994_p9 }
  0x8b   : > { %2004 = shalt.err (!%p2001_p2)
}
  0x8c   : > { %p3231_p5 = scmp.ne.s32.totalorder %s3211_s22, 0  ;;  %s3232_s29 = smov 8  }
  0x8d   : > { %s3233_s9 = smov 128   ;;  %s3234_s5 = smov 256  }
  0x8e   : > { %1652 = dma.hbm_to_vmem [thread:$0]  (!%p3231_p5), %s2507_s8, 4096, %s2535_s11, %s2383_s24, %s3234_s5, %s3233_s9, %s3232_s29  }
  0x8f   : > { %s2566_s25 = scalar_lea.hbm %s3162_s3, %s2365_s26  ;;  %s373_s16 = scalar_lea.vmem [#allocation10], %s2361_s23 }
  0x90   : > { %s382_s20 = sshll.u32 %s373_s16, 4  ;;  %s3235_s6 = sand.u32 1, %s2189_s10   ;;  %s2569_s20 = int_to_ptr.vmem [resolvable:$true] %s382_s20 }
  0x91   : > { %s2573_s30 = scalar_lea.sflag [#allocation11], %s3235_s6  ;;  %s2005_s12 = scalar_lea.hbm %s2566_s25, 4096 }
  0x92   : > { %p2006_p0 = scmp.ne.s32.totalorder %s2566_s25, %s2005_s12  ;;  %s2010_s26 = scalar_lea.hbm %s3162_s3, 16384 }
  0x93   : > { %p2011_p8 = scmp.lt.u32.totalorder %s2566_s25, %s3162_s3  ;;  %p2012_p13 = scmp.lt.u32.totalorder %s2010_s26, %s2005_s12 }
  0x94   : > { %p2008_p3 = pnand %p2006_p0, %p2389_p7  ;;  %p2014_p10 = scmp.lt.u32.totalorder %s2005_s12, %s2566_s25 }
  0x95   : > { %p2013_p6 = por %p2012_p13, %p2011_p8 }
  0x96   : > { %p2009_p12 = pneg %p2008_p3 }
  0x97   : > { %p2015_p9 = por %p2014_p10, %p2013_p6 }
  0x99   : > { %p2016_p1 = pnand %p2015_p9, %p2009_p12 }
  0x9b   : > { %2019 = shalt.err (!%p2016_p1)
}
  0x9c   : > { %s2020_s23 = scalar_lea.vmem %s2569_s20, 4096  ;;  %s2229_s19 = smov [#allocation10]  }
  0x9d   : > { %p2021_p11 = scmp.ne.s32.totalorder %s2569_s20, %s2020_s23  ;;  %s2025_s13 = sshll.u32 %s2229_s19, 4  ;;  %s2026_s13 = int_to_ptr.vmem [resolvable:$false] %s2025_s13 }
  0x9e   : > { %s2027_s16 = scalar_lea.vmem %s2026_s13, 8192  ;;  %p2028_p0 = scmp.lt.s32.totalorder %s2569_s20, %s2026_s13 }
  0x9f   : > { %p2023_p4 = pnand %p2021_p11, %p2389_p7  ;;  %p2029_p3 = scmp.lt.s32.totalorder %s2027_s16, %s2020_s23 }
  0xa1   : > { %p2024_p2 = pneg %p2023_p4  ;;  %p2030_p8 = por %p2029_p3, %p2028_p0 }
  0xa3   : > { %p2031_p13 = pnand %p2030_p8, %p2024_p2 }
  0xa5   : > { %2034 = shalt.err (!%p2031_p13)
}
  0xa6   : > { %1655 = dma.hbm_to_vmem [thread:$0]  (!%p3231_p5), %s2566_s25, 4096, %s2569_s20, %s2573_s30, %s3234_s5, %s3233_s9, %s3232_s29  }
  0xa7   : > { %p3236_p7 = scmp.ne.s32.totalorder %s3214_s21, 0 }
  0xa8   : > { %s3237_s7 = sld [smem:[#allocation22_spill]] (!%p3236_p7)  ;;  %s3238_s6 = sld [smem:[#allocation29_spill]] (!%p3236_p7) }
  0xa9   : > { %412 = sbr.rel (%p3236_p7) target bundleno = 770 (0x302), region = 48 }
  0xae   : > { %s414_s12 = sand.u32 (!%p3236_p7), 1, %s3237_s7   ;;  %p3239_p12 = scmp.ne.s32.totalorder (!%p3236_p7), %s3238_s6, 0 }
  0xaf   : > { %s2603_s24 = sshll.u32 (!%p3236_p7), %s414_s12, 4  ;;  %s415_s8 = scalar_lea.sflag (!%p3236_p7), [#allocation5], %s414_s12 }
  0xb0   : > { %2148 = dma.done.wait (%p3239_p12), %s415_s8, 256  }
  0xb1   : > { %2150 = vsyncadd (%p3239_p12), %s415_s8, 4294967040  ;;  %s3240_s22 = sld [smem:[#allocation21_spill]]  ;;  %s423_s29 = sand.u32 1, %s2424_s14  }
  0xb2   : > { %s424_s5 = scalar_lea.sflag [#allocation8], %s423_s29  ;;  %p3241_p5 = scmp.ne.s32.totalorder %s3223_s4, 0 }
  0xb7   : > { %s425_s9 = sand.u32 1, %s3240_s22  }
  0xb8   : > { %s1510_s21 = sshll.u32 %s425_s9, 8 }
  0xb9   : > { %s2612_s25 = scalar_lea.vmem [#allocation7], %s1510_s21 }
  0xba   : > { %2152 = dma.done.wait (%p3241_p5), %s424_s5, 8192  }
  0xbb   : > { %2154 = vsyncadd (%p3241_p5), %s424_s5, 4294959104  ;;  %s2618_s20 = scalar_lea.vmem [#allocation9], %s1510_s21  ;;  %s442_s30 = scalar_lea.sflag [#allocation11], %s425_s9 }
  0xbc   : > { %s2620_s11 = scalar_lea.vmem [#allocation10], %s1510_s21 }
  0xbd   : > { %2156 = dma.done.wait (%p3241_p5), %s442_s30, 4096  }
  0xbe   : > { %2158 = vsyncadd (%p3241_p5), %s442_s30, 4294963200  ;;  %s3242_s14 = sld [smem:[#allocation25_spill]]  ;;  %s2627_s17 = sand.u32 1, %s2173_s28  }
  0xbf   : > { %s1513_s23 = sshll.u32 %s2627_s17, 3  ;;  %s3243_s16 = sld [smem:[#allocation35_spill]] }
  0xc0   : > { %s3244_s12 = sld [smem:[#allocation36_spill]]  ;;  %s3245_s9 = sld [smem:[#allocation37_spill]] }
  0xc1   : > { %s2646_s5 = scalar_lea.vmem [#allocation12], %s1513_s23  ;;  %s2648_s30 = scalar_lea.vmem [#allocation13], %s1513_s23 }
  0xc2   : > { %s3246_s26 = sld [smem:[#allocation24_spill]] }
  0xc4   : > { %p511_p6 = scmp.lt.s32.totalorder %s3242_s14, 1 }
  0xc6   : > { %s3284_s14 = smov (!%p511_p6, %s3242_s14), 1 }
  0xc7   : > { %s513_s7 = scalar_lea.vmem %s3243_s16, %s3284_s14  ;;  %s516_s8 = scalar_lea.vmem %s3244_s12, %s3284_s14 }
  0xc8   : > { %s519_s21 = scalar_lea.vmem %s3245_s9, %s3284_s14  ;;  %p1515_p10 = scmp.ne.s32.totalorder %s3246_s26, 0 }
  0xc9   : > { %vm525_vm0 = vcmask (!%p1515_p10), 0   ;;  %v2230_v0 = vmov (!%p1515_p10), 0.0  }
  0xca   : > { %523 = sbr.rel (%p1515_p10) target bundleno = 209 (0xd1), region = 68  ;;  %524 = vst [vmem:[#allocation2] sm:$0xff] (!%p1515_p10), %v2230_v0  ;;  %526 = vst.msk [vmem:[#allocation3] sm:$0x1] (!%p1515_p10), %vm525_vm0, %v2230_v0 }
  0xd1 PF: > { %v575_v1 = vld [vmem:[%s2618_s20 + $0x80] sm:$0xff]  ;;  %v576_v2 = vld [vmem:[%s2618_s20 + $0x88] sm:$0xff]  ;;  %v577_v18 = vld [vmem:[%s2618_s20 + $0x90] sm:$0xff]  ;;  %s3247_s26 = scalar_lea.vmem [#allocation4], %s2603_s24  ;;  %vm1189_vm1 = vcmask 0  }
  0xd2   : > { %v2653_v3 = vmul.f32 0.5, %v575_v1  ;;  %v2655_v4 = vmul.f32 0.5, %v576_v2  ;;  %v559_v5 = vld [vmem:[%s2618_s20] sm:$0xff]  ;;  %v2663_v8 = vld [vmem:[%s2612_s25 + $0x8] sm:$0xff]  ;;  %v578_v22 = vld [vmem:[%s2618_s20 + $0x98] sm:$0xff]  ;;  %v2688_v24 = vmul.f32 0.5, %v577_v18 }
  0xd3   : > { %v2660_v7 = vld [vmem:[%s2612_s25] sm:$0xff]  ;;  %v560_v9 = vld [vmem:[%s2618_s20 + $0x8] sm:$0xff]  ;;  %v2666_v10 = vmul.f32 0.5, %v559_v5  ;;  %v891_v21 = vsub.f32 0.0, %v2663_v8  ;;  %v2686_v23 = vld [vmem:[%s2612_s25 + $0x90] sm:$0xff]  ;;  %v2690_v25 = vmul.f32 0.5, %v578_v22 }
  0xd4   : > { %v655_v6 = vmul.f32 1.442695, %v2653_v3  ;;  %v2669_v11 = vld [vmem:[%s2612_s25 + $0x80] sm:$0xff]  ;;  %v2672_v12 = vld [vmem:[%s2612_s25 + $0x88] sm:$0xff]  ;;  %v657_v13 = vmul.f32 1.442695, %v2655_v4 }
  0xd5   : > { %v2675_v14 = vmul.f32 0.5, %v560_v9  ;;  %v906_v15 = vsub.f32 0.0, %v2669_v11  ;;  %v907_v16 = vsub.f32 0.0, %v2672_v12  ;;  %v623_v17 = vmul.f32 1.442695, %v2666_v10  ;;  %v561_v26 = vld [vmem:[%s2618_s20 + $0x10] sm:$0xff] }
  0xd6   : > { %1782 = vpow2.f32 %v655_v6  ;;  %v890_v20 = vsub.f32 0.0, %v2660_v7  ;;  %v908_v27 = vsub.f32 0.0, %v2686_v23  ;;  %v562_v28 = vld [vmem:[%s2618_s20 + $0x18] sm:$0xff]  ;;  %v659_v31 = vmul.f32 1.442695, %v2688_v24  ;;  %v2703_v37 = vld [vmem:[%s2612_s25 + $0x10] sm:$0xff] }
  0xd7   : > { %1784 = vpow2.f32 %v657_v13  ;;  %v625_v19 = vmul.f32 1.442695, %v2675_v14  ;;  %v938_v29 = vmul.f32 %v906_v15, %v906_v15  ;;  %v2696_v30 = vld [vmem:[%s2612_s25 + $0x98] sm:$0xff]  ;;  %v661_v32 = vmul.f32 1.442695, %v2690_v25  ;;  %v579_v39 = vld [vmem:[%s2618_s20 + $0xa0] sm:$0xff] }
  0xd8   : > { %1786 = vpow2.f32 %v623_v17  ;;  %v2700_v33 = vmul.f32 0.5, %v561_v26  ;;  %v939_v34 = vmul.f32 %v907_v16, %v907_v16  ;;  %v922_v35 = vmul.f32 %v890_v20, %v890_v20  ;;  %v580_v40 = vld [vmem:[%s2618_s20 + $0xa8] sm:$0xff]  ;;  %v703_v46 = vld [vmem:[%s2620_s11 + $0x80] sm:$0xff]  ;;  %v2716_v47 = vld [vmem:[%s2612_s25 + $0x18] sm:$0xff] }
  0xd9   : > { %1788 = vpow2.f32 %v625_v19  ;;  %v923_v36 = vmul.f32 %v891_v21, %v891_v21  ;;  %v2705_v38 = vmul.f32 0.5, %v562_v28  ;;  %v909_v41 = vsub.f32 0.0, %v2696_v30  ;;  %v704_v51 = vld [vmem:[%s2620_s11 + $0x88] sm:$0xff]  ;;  %v687_v56 = vld [vmem:[%s2620_s11] sm:$0xff] }
  0xda   : > { %1790 = vpow2.f32 %v659_v31  ;;  %v627_v42 = vmul.f32 1.442695, %v2700_v33  ;;  %v2711_v43 = vmul.f32 0.5, %v579_v39  ;;  %v940_v44 = vmul.f32 %v908_v27, %v908_v27  ;;  %v688_v63 = vld [vmem:[%s2620_s11 + $0x8] sm:$0xff]  ;;  %v563_v13 = vld [vmem:[%s2618_s20 + $0x20] sm:$0xff]  ;;  %v705_v27 = vld [vmem:[%s2620_s11 + $0x90] sm:$0xff] }
  0xdb   : > { %1792 = vpow2.f32 %v661_v32  ;;  %v629_v45 = vmul.f32 1.442695, %v2705_v38  ;;  %v892_v48 = vsub.f32 0.0, %v2703_v37  ;;  %v2719_v49 = vmul.f32 0.5, %v580_v40  ;;  %v564_v28 = vld [vmem:[%s2618_s20 + $0x28] sm:$0xff]  ;;  %v706_v32 = vld [vmem:[%s2620_s11 + $0x98] sm:$0xff] }
  0xdc   : > { %1794 = vpow2.f32 %v627_v42  ;;  %v663_v50 = vmul.f32 1.442695, %v2711_v43  ;;  %v2723_v52 = vadd.f32 1.0, %v938_v29  ;;  %v2725_v53 = vadd.f32 1.0, %v939_v34  ;;  %v689_v39 = vld [vmem:[%s2620_s11 + $0x10] sm:$0xff] }
  0xdd   : > { %v2727_v54 = vadd.f32 1.0, %v922_v35  ;;  %1796 = vpow2.f32 %v629_v45  ;;  %v2730_v57 = vadd.f32 1.0, %v923_v36  ;;  %v2732_v58 = vmul.f32 %v909_v41, %v909_v41 }
  0xde   : > { %1798 = vpow2.f32 %v663_v50  ;;  %v665_v59 = vmul.f32 1.442695, %v2719_v49  ;;  %v2736_v0 = vadd.f32 1.0, %v940_v44  ;;  %v893_v1 = vsub.f32 0.0, %v2716_v47  ;;  %v690_v44 = vld [vmem:[%s2620_s11 + $0x18] sm:$0xff] }
  0xdf   : > { %v2739_v9 = vmul.f32 %v892_v48, %v892_v48  ;;  %v2748_v34 = vmul.f32 0.5, %v563_v13  ;;  %v2753_v45 = vmul.f32 0.5, %v564_v28  ;;  %v708_v13 = vld [vmem:[%s2620_s11 + $0xa8] sm:$0xff] }
  0xe0   : > { %v1783_v55 = vpop.eup %1782  ;;  %1800 = vpow2.f32 %v665_v59 }
  0xe1   : > { %v1785_v60 = vpop.eup %1784  ;;  %v735_v61 = vmul.f32 %v1783_v55, %v703_v46  ;;  %v874_v62 = vmul.f32 %v1783_v55, %v1783_v55 }
  0xe2   : > { %v1787_v2 = vpop.eup %1786  ;;  %v736_v5 = vmul.f32 %v1785_v60, %v704_v51  ;;  %v875_v6 = vmul.f32 %v1785_v60, %v1785_v60  ;;  %v707_v51 = vld [vmem:[%s2620_s11 + $0xa0] sm:$0xff] }
  0xe3   : > { %v1789_v15 = vpop.eup %1788  ;;  %v767_v16 = vadd.f32 %v735_v61, %v2669_v11  ;;  %v1002_v17 = vmul.f32 2.0, %v874_v62  ;;  %v719_v18 = vmul.f32 %v1787_v2, %v687_v56  ;;  %v858_v19 = vmul.f32 %v1787_v2, %v1787_v2 }
  0xe4   : > { %v768_v20 = vadd.f32 %v736_v5, %v2672_v12  ;;  %v1003_v21 = vmul.f32 2.0, %v875_v6  ;;  %v720_v22 = vmul.f32 %v1789_v15, %v688_v63  ;;  %v859_v26 = vmul.f32 %v1789_v15, %v1789_v15  ;;  %v1791_v11 = vpop.eup %1790  ;;  %v547_v6 = vld [vmem:[%s2612_s25 + $0xa0] sm:$0xff] }
  0xe5   : > { %1802 = vrcp.f32 %v1002_v17  ;;  %v751_v29 = vadd.f32 %v719_v18, %v2660_v7  ;;  %v986_v31 = vmul.f32 2.0, %v858_v19  ;;  %v1793_v40 = vpop.eup %1792  ;;  %v737_v41 = vmul.f32 %v1791_v11, %v705_v27 }
  0xe6   : > { %v1595_v35 = vpack.c.bf16 %v768_v20, %v767_v16  ;;  %1804 = vrcp.f32 %v1003_v21  ;;  %v752_v12 = vadd.f32 %v720_v22, %v2663_v8  ;;  %v987_v36 = vmul.f32 2.0, %v859_v26  ;;  %v1795_v7 = vpop.eup %1794  ;;  %v548_v21 = vld [vmem:[%s2612_s25 + $0xa8] sm:$0xff] }
  0xe7   : > { %1806 = vrcp.f32 %v986_v31  ;;  %v876_v42 = vmul.f32 %v1791_v11, %v1791_v11  ;;  %v738_v48 = vmul.f32 %v1793_v40, %v706_v32  ;;  %v877_v50 = vmul.f32 %v1793_v40, %v1793_v40  ;;  %v1797_v55 = vpop.eup %1796 }
  0xe8   : > { %1596 = vmatprep.subr.bf16.mxu0 %v1595_v35  ;;  %v1597_v46 = vpack.c.bf16 %v752_v12, %v751_v29  ;;  %1808 = vrcp.f32 %v987_v36  ;;  %v769_v8 = vadd.f32 %v737_v41, %v2686_v23  ;;  %v721_v59 = vmul.f32 %v1795_v7, %v689_v39  ;;  %v1799_v61 = vpop.eup %1798 }
  0xe9   : > { %v1004_v56 = vmul.f32 2.0, %v876_v42  ;;  %v860_v60 = vmul.f32 %v1795_v7, %v1795_v7  ;;  %v770_v62 = vadd.f32 %v738_v48, %v2696_v30  ;;  %v1005_v63 = vmul.f32 2.0, %v877_v50 }
  0xea   : > { %1598 = vmatpush3.bf16.msra.mxu0 %v1597_v46  ;;  %v722_v2 = vmul.f32 %v1797_v55, %v690_v44  ;;  %v861_v5 = vmul.f32 %v1797_v55, %v1797_v55  ;;  %v753_v15 = vadd.f32 %v721_v59, %v2703_v37  ;;  %v739_v17 = vmul.f32 %v1799_v61, %v707_v51  ;;  %v1801_v18 = vpop.eup %1800  ;;  %v581_v46 = vld [vmem:[%s2618_s20 + $0xb0] sm:$0xff]  ;;  %v582_v55 = vld [vmem:[%s2618_s20 + $0xb8] sm:$0xff] }
  0xeb   : > { %1810 = vrcp.f32 %v1004_v56  ;;  %v988_v16 = vmul.f32 2.0, %v860_v60  ;;  %v1599_v23 = vpack.c.bf16 %v770_v62, %v769_v8  ;;  %v740_v22 = vmul.f32 %v1801_v18, %v708_v13  ;;  %v785_v8 = vld [vmem:[%s3247_s26 + $0x8] sm:$0xff]  ;;  %v531_v13 = vld [vmem:[%s2612_s25 + $0x20] sm:$0xff] }
  0xec   : > { %1812 = vrcp.f32 %v1005_v63  ;;  %v754_v19 = vadd.f32 %v722_v2, %v2716_v47  ;;  %v989_v20 = vmul.f32 2.0, %v861_v5  ;;  %v771_v30 = vadd.f32 %v739_v17, %v547_v6  ;;  %850 = vmatprep.mubr.f32.mxu0 %v785_v8 }
  0xed   : > { %1814 = vrcp.f32 %v988_v16  ;;  %v878_v26 = vmul.f32 %v1799_v61, %v1799_v61  ;;  %1600 = vmatprep.subr.bf16.mxu0 %v1599_v23  ;;  %v879_v28 = vmul.f32 %v1801_v18, %v1801_v18  ;;  %v631_v29 = vmul.f32 1.442695, %v2748_v34  ;;  %v532_v23 = vld [vmem:[%s2612_s25 + $0x28] sm:$0xff] }
  0xee   : > { %v1601_v27 = vpack.c.bf16 %v754_v19, %v753_v15  ;;  %1816 = vrcp.f32 %v989_v20  ;;  %v772_v31 = vadd.f32 %v740_v22, %v548_v21  ;;  %v910_v32 = vsub.f32 0.0, %v547_v6  ;;  %v565_v22 = vld [vmem:[%s2618_s20 + $0x30] sm:$0xff] }
  0xef   : > { %v1803_v37 = vpop.eup %1802  ;;  %v1006_v11 = vmul.f32 2.0, %v878_v26  ;;  %v633_v35 = vmul.f32 1.442695, %v2753_v45  ;;  %v911_v39 = vsub.f32 0.0, %v548_v21  ;;  %v1007_v40 = vmul.f32 2.0, %v879_v28 }
  0xf0   : > { %v1805_v12 = vpop.eup %1804  ;;  %v1051_v36 = vmul.f32 %v1803_v37, %v2723_v52  ;;  %1602 = vmatpush3.bf16.msra.mxu0 %v1601_v27  ;;  %1818 = vpow2.f32 %v631_v29  ;;  %v925_v44 = vmul.f32 %v893_v1, %v893_v1  ;;  %v1603_v7 = vpack.c.bf16 %v772_v31, %v771_v30  ;;  %v566_v30 = vld [vmem:[%s2618_s20 + $0x38] sm:$0xff]  ;;  %v692_v37 = vld [vmem:[%s2620_s11 + $0x28] sm:$0xff] }
  0xf1   : > { %v1807_v41 = vpop.eup %1806  ;;  %v1053_v42 = vmul.f32 %v1805_v12, %v2725_v53  ;;  %1820 = vrcp.f32 %v1006_v11  ;;  %v973_v51 = vadd.f32 1.0, %v2732_v58  ;;  %v942_v1 = vmul.f32 %v910_v32, %v910_v32 }
  0xf2   : > { %v1809_v48 = vpop.eup %1808  ;;  %v2772_v50 = vadd.f32 %v1051_v36, %v2653_v3  ;;  %v1019_v52 = vmul.f32 %v1807_v41, %v2727_v54  ;;  %1822 = vrcp.f32 %v1007_v40  ;;  %1604 = vmatprep.subr.bf16.mxu0 %v1603_v7  ;;  %v956_v3 = vadd.f32 1.0, %v2739_v9 }
  0xf3   : > { %v2778_v53 = vadd.f32 %v1053_v42, %v2655_v4  ;;  %v1021_v47 = vmul.f32 %v1809_v48, %v2730_v57  ;;  %1824 = vpow2.f32 %v633_v35  ;;  %v943_v54 = vmul.f32 %v911_v39, %v911_v39 }
  0xf4   : > { %v1082_v56 = vadd.f32 %v1019_v52, %v2666_v10  ;;  %v2785_v59 = vmul.f32 0.5, %v581_v46  ;;  %v957_v60 = vadd.f32 1.0, %v925_v44  ;;  %v2788_v57 = vmul.f32 0.5, %v582_v55 }
  0xf5   : > { %v1811_v58 = vpop.eup %1810  ;;  %v1083_v4 = vadd.f32 %v1021_v47, %v2675_v14  ;;  %v974_v6 = vadd.f32 1.0, %v942_v1  ;;  %v975_v18 = vadd.f32 1.0, %v943_v54  ;;  %v894_v28 = vsub.f32 0.0, %v531_v13  ;;  %v583_v47 = vld [vmem:[%s2618_s20 + $0xc0] sm:$0xff]  ;;  %v584_v1 = vld [vmem:[%s2618_s20 + $0xc8] sm:$0xff] }
  0xf6   : > { %v1813_v61 = vpop.eup %1812  ;;  %v1516_v62 = vadd.f32 -0.5, %v1082_v56  ;;  %v1055_v63 = vmul.f32 %v1811_v58, %v2736_v0  ;;  %v667_v10 = vmul.f32 1.442695, %v2785_v59  ;;  %v669_v14 = vmul.f32 1.442695, %v2788_v57  ;;  %v691_v0 = vld [vmem:[%s2620_s11 + $0x20] sm:$0xff] }
  0xf7   : > { %v1815_v9 = vpop.eup %1814  ;;  %v1517_v2 = vadd.f32 -0.5, %v1083_v4  ;;  %v1057_v5 = vmul.f32 %v1813_v61, %v973_v51  ;;  %v895_v11 = vsub.f32 0.0, %v532_v23  ;;  %v2809_v39 = vmul.f32 0.5, %v566_v30  ;;  %v710_v58 = vld [vmem:[%s2620_s11 + $0xb8] sm:$0xff] }
  0xf8   : > { %v1817_v15 = vpop.eup %1816  ;;  %v2795_v16 = vadd.f32 %v1055_v63, %v2688_v24  ;;  %v1023_v17 = vmul.f32 %v1815_v9, %v956_v3  ;;  %1826 = vpow2.f32 %v667_v10  ;;  %v926_v54 = vmul.f32 %v894_v28, %v894_v28  ;;  %v550_v9 = vld [vmem:[%s2612_s25 + $0xb8] sm:$0xff] }
  0xf9   : > { %v1146_v19 = vadd.f32 %v1517_v2, %v1516_v62  ;;  %v2800_v20 = vadd.f32 %v1057_v5, %v2690_v25  ;;  %v1025_v21 = vmul.f32 %v1817_v15, %v957_v60  ;;  %1828 = vpow2.f32 %v669_v14  ;;  %v549_v60 = vld [vmem:[%s2612_s25 + $0xb0] sm:$0xff] }
  0xfa   : > { %v1819_v26 = vpop.eup %1818  ;;  %v1084_v27 = vadd.f32 %v1023_v17, %v2700_v33  ;;  %v2807_v25 = vmul.f32 0.5, %v565_v22  ;;  %v637_v55 = vmul.f32 1.442695, %v2809_v39  ;;  %v2826_v61 = vmul.f32 0.5, %v583_v47  ;;  %v567_v17 = vld [vmem:[%s2618_s20 + $0x40] sm:$0xff] }
  0xfb   : > { %v1821_v24 = vpop.eup %1820  ;;  %v1085_v29 = vadd.f32 %v1025_v21, %v2705_v38  ;;  %v723_v31 = vmul.f32 %v1819_v26, %v691_v0  ;;  %v862_v32 = vmul.f32 %v1819_v26, %v1819_v26  ;;  %v2828_v62 = vmul.f32 0.5, %v584_v1  ;;  %v568_v21 = vld [vmem:[%s2618_s20 + $0x48] sm:$0xff]  ;;  %v586_v1 = vld [vmem:[%s2618_s20 + $0xd8] sm:$0xff] }
  0xfc   : > { %v1823_v35 = vpop.eup %1822  ;;  %v1518_v12 = vadd.f32 -0.5, %v1084_v27  ;;  %v1059_v36 = vmul.f32 %v1821_v24, %v974_v6  ;;  %v635_v51 = vmul.f32 1.442695, %v2807_v25  ;;  %v927_v10 = vmul.f32 %v895_v11, %v895_v11 }
  0xfd   : > { %v1825_v40 = vpop.eup %1824  ;;  %v1519_v41 = vadd.f32 -0.5, %v1085_v29  ;;  %v1061_v33 = vmul.f32 %v1823_v35, %v975_v18  ;;  %v755_v42 = vadd.f32 %v723_v31, %v531_v13  ;;  %v990_v44 = vmul.f32 2.0, %v862_v32  ;;  %v533_v29 = vld [vmem:[%s2612_s25 + $0x30] sm:$0xff] }
  0xfe   : > { %v1147_v38 = vadd.f32 %v1518_v12, %v1146_v19  ;;  %v2812_v7 = vadd.f32 %v1059_v36, %v2711_v43  ;;  %v724_v46 = vmul.f32 %v1825_v40, %v692_v37  ;;  %v863_v48 = vmul.f32 %v1825_v40, %v1825_v40  ;;  %v709_v43 = vld [vmem:[%s2620_s11 + $0xb0] sm:$0xff] }
  0xff   : > { %v2815_v52 = vadd.f32 %v1061_v33, %v2719_v49  ;;  %1830 = vrcp.f32 %v990_v44  ;;  %v912_v14 = vsub.f32 0.0, %v549_v60  ;;  %v671_v15 = vmul.f32 1.442695, %v2826_v61  ;;  %v585_v31 = vld [vmem:[%s2618_s20 + $0xd0] sm:$0xff]  ;;  %v694_v44 = vld [vmem:[%s2620_s11 + $0x38] sm:$0xff] }
 0x100   : > { %v2821_v8 = vadd.f32 %v1519_v41, %v1147_v38  ;;  %v756_v56 = vadd.f32 %v724_v46, %v532_v23  ;;  %v991_v3 = vmul.f32 2.0, %v863_v48  ;;  %1832 = vpow2.f32 %v635_v51  ;;  %v693_v12 = vld [vmem:[%s2620_s11 + $0x30] sm:$0xff]  ;;  %v534_v41 = vld [vmem:[%s2612_s25 + $0x38] sm:$0xff] }
 0x101   : > { %v913_v23 = vsub.f32 0.0, %v550_v9  ;;  %v673_v19 = vmul.f32 1.442695, %v2828_v62  ;;  %v958_v22 = vadd.f32 1.0, %v926_v54  ;;  %v2835_v27 = vmul.f32 0.5, %v567_v17  ;;  %v551_v17 = vld [vmem:[%s2612_s25 + $0xc0] sm:$0xff] }
 0x102   : > { %v1827_v4 = vpop.eup %1826  ;;  %v1605_v49 = vpack.c.bf16 %v756_v56, %v755_v42  ;;  %1834 = vrcp.f32 %v991_v3  ;;  %v959_v28 = vadd.f32 1.0, %v927_v10  ;;  %v2838_v37 = vmul.f32 0.5, %v568_v21  ;;  %v711_v10 = vld [vmem:[%s2620_s11 + $0xc0] sm:$0xff] }
 0x103   : > { %v1829_v63 = vpop.eup %1828  ;;  %v741_v2 = vmul.f32 %v1827_v4, %v709_v43  ;;  %v880_v5 = vmul.f32 %v1827_v4, %v1827_v4  ;;  %1836 = vpow2.f32 %v637_v55  ;;  %v944_v11 = vmul.f32 %v912_v14, %v912_v14 }
 0x104   : > { %1606 = vmatpush3.bf16.msra.mxu0 %v1605_v49  ;;  %v742_v6 = vmul.f32 %v1829_v63, %v710_v58  ;;  %v881_v13 = vmul.f32 %v1829_v63, %v1829_v63  ;;  %1838 = vpow2.f32 %v671_v15  ;;  %v945_v35 = vmul.f32 %v913_v23, %v913_v23 }
 0x105   : > { %v773_v18 = vadd.f32 %v741_v2, %v549_v60  ;;  %v1008_v0 = vmul.f32 2.0, %v880_v5  ;;  %v639_v36 = vmul.f32 1.442695, %v2835_v27  ;;  %v641_v33 = vmul.f32 1.442695, %v2838_v37 }
 0x106   : > { %v774_v30 = vadd.f32 %v742_v6, %v550_v9  ;;  %v1009_v26 = vmul.f32 2.0, %v881_v13  ;;  %v896_v38 = vsub.f32 0.0, %v533_v29  ;;  %v2846_v46 = vmul.f32 0.5, %v585_v31  ;;  %v552_v31 = vld [vmem:[%s2612_s25 + $0xc8] sm:$0xff] }
 0x107   : > { %1840 = vrcp.f32 %v1008_v0  ;;  %v976_v43 = vadd.f32 1.0, %v944_v11  ;;  %v977_v54 = vadd.f32 1.0, %v945_v35  ;;  %v897_v58 = vsub.f32 0.0, %v534_v41  ;;  %v695_v35 = vld [vmem:[%s2620_s11 + $0x40] sm:$0xff] }
 0x108   : > { %v1607_v24 = vpack.c.bf16 %v774_v30, %v773_v18  ;;  %1842 = vrcp.f32 %v1009_v26  ;;  %v928_v2 = vmul.f32 %v896_v38, %v896_v38  ;;  %v2852_v5 = vmul.f32 0.5, %v586_v1 }
 0x109   : > { %v1831_v32 = vpop.eup %1830  ;;  %1844 = vpow2.f32 %v673_v19  ;;  %v675_v18 = vmul.f32 1.442695, %v2846_v46  ;;  %v712_v19 = vld [vmem:[%s2620_s11 + $0xc8] sm:$0xff]  ;;  %v915_v1 = vsub.f32 0.0, %v552_v31 }
 0x10a   : > { %v1027_v40 = vmul.f32 %v1831_v32, %v958_v22  ;;  %1608 = vmatprep.subr.bf16.mxu0 %v1607_v24  ;;  %v1833_v42 = vpop.eup %1832  ;;  %1846 = vpow2.f32 %v639_v36  ;;  %v677_v38 = vmul.f32 1.442695, %v2852_v5 }
 0x10b   : > { %v725_v55 = vmul.f32 %v1833_v42, %v693_v12  ;;  %v864_v47 = vmul.f32 %v1833_v42, %v1833_v42  ;;  %1848 = vpow2.f32 %v641_v33 }
 0x10c   : > { %v1835_v48 = vpop.eup %1834  ;;  %v1086_v51 = vadd.f32 %v1027_v40, %v2748_v34 }
 0x10d   : > { %v1837_v56 = vpop.eup %1836  ;;  %v1029_v3 = vmul.f32 %v1835_v48, %v959_v28  ;;  %v757_v60 = vadd.f32 %v725_v55, %v533_v29  ;;  %v992_v34 = vmul.f32 2.0, %v864_v47  ;;  %v914_v28 = vsub.f32 0.0, %v551_v17 }
 0x10e   : > { %v1520_v4 = vadd.f32 -0.5, %v1086_v51  ;;  %v726_v49 = vmul.f32 %v1837_v56, %v694_v44  ;;  %v865_v63 = vmul.f32 %v1837_v56, %v1837_v56  ;;  %v1839_v6 = vpop.eup %1838  ;;  %v929_v44 = vmul.f32 %v897_v58, %v897_v58  ;;  %v2871_v56 = vld [vmem:[%s2612_s25 + $0x40] sm:$0xff]  ;;  %v2876_v58 = vld [vmem:[%s2612_s25 + $0x48] sm:$0xff] }
 0x10f   : > { %v1087_v9 = vadd.f32 %v1029_v3, %v2753_v45  ;;  %1850 = vrcp.f32 %v992_v34  ;;  %v743_v21 = vmul.f32 %v1839_v6, %v711_v10  ;;  %v882_v45 = vmul.f32 %v1839_v6, %v1839_v6  ;;  %v587_v34 = vld [vmem:[%s2618_s20 + $0xe0] sm:$0xff] }
 0x110   : > { %v1149_v13 = vadd.f32 %v1520_v4, %v2821_v8  ;;  %v758_v14 = vadd.f32 %v726_v49, %v534_v41  ;;  %v993_v15 = vmul.f32 2.0, %v865_v63  ;;  %v696_v41 = vld [vmem:[%s2620_s11 + $0x48] sm:$0xff]  ;;  %v960_v47 = vadd.f32 1.0, %v928_v2 }
 0x111   : > { %v1841_v23 = vpop.eup %1840  ;;  %v1521_v0 = vadd.f32 -0.5, %v1087_v9  ;;  %v775_v32 = vadd.f32 %v743_v21, %v551_v17  ;;  %v1010_v11 = vmul.f32 2.0, %v882_v45  ;;  %v588_v17 = vld [vmem:[%s2618_s20 + $0xe8] sm:$0xff] }
 0x112   : > { %v1843_v22 = vpop.eup %1842  ;;  %v1063_v30 = vmul.f32 %v1841_v23, %v976_v43  ;;  %v1609_v26 = vpack.c.bf16 %v758_v14, %v757_v60  ;;  %1852 = vrcp.f32 %v993_v15  ;;  %v569_v43 = vld [vmem:[%s2618_s20 + $0x50] sm:$0xff]  ;;  %v961_v60 = vadd.f32 1.0, %v929_v44 }
 0x113   : > { %v1845_v8 = vpop.eup %1844  ;;  %v2858_v24 = vadd.f32 %v1521_v0, %v1149_v13  ;;  %v1065_v29 = vmul.f32 %v1843_v22, %v977_v54  ;;  %1854 = vpow2.f32 %v675_v18  ;;  %v570_v54 = vld [vmem:[%s2618_s20 + $0x58] sm:$0xff]  ;;  %v2880_v9 = vmul.f32 0.5, %v569_v43  ;;  %v2899_v44 = vld [vmem:[%s2612_s25 + $0xd0] sm:$0xff] }
 0x114   : > { %v2863_v12 = vadd.f32 %v1063_v30, %v2785_v59  ;;  %1610 = vmatpush3.bf16.msra.mxu0 %v1609_v26  ;;  %v744_v36 = vmul.f32 %v1845_v8, %v712_v19  ;;  %v883_v40 = vmul.f32 %v1845_v8, %v1845_v8  ;;  %v1847_v33 = vpop.eup %1846  ;;  %1856 = vrcp.f32 %v1010_v11  ;;  %v713_v30 = vld [vmem:[%s2620_s11 + $0xd0] sm:$0xff]  ;;  %v2913_v43 = vld [vmem:[%s2612_s25 + $0xd8] sm:$0xff] }
 0x115   : > { %v2867_v42 = vadd.f32 %v1065_v29, %v2788_v57  ;;  %v1849_v48 = vpop.eup %1848  ;;  %v727_v55 = vmul.f32 %v1847_v33, %v695_v35  ;;  %v946_v57 = vmul.f32 %v914_v28, %v914_v28  ;;  %v866_v10 = vmul.f32 %v1847_v33, %v1847_v33 }
 0x116   : > { %v776_v59 = vadd.f32 %v744_v36, %v552_v31  ;;  %v1011_v51 = vmul.f32 2.0, %v883_v40  ;;  %v728_v3 = vmul.f32 %v1849_v48, %v696_v41  ;;  %v2882_v2 = vmul.f32 0.5, %v570_v54 }
 0x117   : > { %v759_v49 = vadd.f32 %v727_v55, %v2871_v56  ;;  %v947_v13 = vmul.f32 %v915_v1, %v915_v1  ;;  %v867_v15 = vmul.f32 %v1849_v48, %v1849_v48  ;;  %v978_v0 = vadd.f32 1.0, %v946_v57  ;;  %v571_v48 = vld [vmem:[%s2618_s20 + $0x60] sm:$0xff] }
 0x118   : > { %v1611_v4 = vpack.c.bf16 %v776_v59, %v775_v32  ;;  %1858 = vrcp.f32 %v1011_v51  ;;  %v760_v63 = vadd.f32 %v728_v3, %v2876_v58  ;;  %v643_v19 = vmul.f32 1.442695, %v2880_v9 }
 0x119   : > { %1860 = vpow2.f32 %v677_v38  ;;  %v1851_v6 = vpop.eup %1850  ;;  %v645_v21 = vmul.f32 1.442695, %v2882_v2  ;;  %v994_v22 = vmul.f32 2.0, %v866_v10  ;;  %v2889_v26 = vmul.f32 0.5, %v587_v34  ;;  %v697_v10 = vld [vmem:[%s2620_s11 + $0x50] sm:$0xff]  ;;  %v698_v34 = vld [vmem:[%s2620_s11 + $0x58] sm:$0xff] }
 0x11a   : > { %1612 = vmatprep.subr.bf16.mxu0 %v1611_v4  ;;  %v1613_v14 = vpack.c.bf16 %v760_v63, %v759_v49  ;;  %v1031_v23 = vmul.f32 %v1851_v6, %v960_v47  ;;  %1862 = vpow2.f32 %v643_v19  ;;  %v2894_v29 = vmul.f32 0.5, %v588_v17 }
 0x11b   : > { %v979_v11 = vadd.f32 1.0, %v947_v13  ;;  %v995_v35 = vmul.f32 2.0, %v867_v15  ;;  %1864 = vpow2.f32 %v645_v21  ;;  %v679_v38 = vmul.f32 1.442695, %v2889_v26 }
 0x11c   : > { %v1853_v18 = vpop.eup %1852  ;;  %1614 = vmatpush3.bf16.msra.mxu0 %v1613_v14  ;;  %v1088_v8 = vadd.f32 %v1031_v23, %v2807_v25  ;;  %1866 = vrcp.f32 %v994_v22  ;;  %v714_v25 = vld [vmem:[%s2620_s11 + $0xd8] sm:$0xff]  ;;  %v898_v55 = vsub.f32 0.0, %v2871_v56  ;;  %v681_v47 = vmul.f32 1.442695, %v2894_v29  ;;  %v589_v22 = vld [vmem:[%s2618_s20 + $0xf0] sm:$0xff] }
 0x11d   : > { %v1033_v45 = vmul.f32 %v1853_v18, %v961_v60  ;;  %v2891_v28 = vpop.eup %1854  ;;  %1868 = vrcp.f32 %v995_v35  ;;  %v2920_v57 = vmul.f32 0.5, %v571_v48  ;;  %v899_v49 = vsub.f32 0.0, %v2876_v58  ;;  %v537_v18 = vld [vmem:[%s2612_s25 + $0x50] sm:$0xff] }
 0x11e   : > { %v1857_v31 = vpop.eup %1856  ;;  %v1522_v36 = vadd.f32 -0.5, %v1088_v8  ;;  %v745_v41 = vmul.f32 %v2891_v28, %v713_v30  ;;  %1870 = vpow2.f32 %v679_v38  ;;  %v930_v60 = vmul.f32 %v898_v55, %v898_v55  ;;  %v590_v30 = vld [vmem:[%s2618_s20 + $0xf8] sm:$0xff] }
 0x11f   : > { %v1089_v32 = vadd.f32 %v1033_v45, %v2809_v39  ;;  %v1067_v40 = vmul.f32 %v1857_v31, %v978_v0  ;;  %1872 = vpow2.f32 %v681_v47  ;;  %v647_v15 = vmul.f32 1.442695, %v2920_v57  ;;  %v538_v31 = vld [vmem:[%s2612_s25 + $0x58] sm:$0xff] }
 0x120   : > { %v1151_v39 = vadd.f32 %v1522_v36, %v2858_v24  ;;  %v777_v24 = vadd.f32 %v745_v41, %v2899_v44  ;;  %v931_v17 = vmul.f32 %v899_v49, %v899_v49  ;;  %v962_v19 = vadd.f32 1.0, %v930_v60 }
 0x121   : > { %v1523_v33 = vadd.f32 -0.5, %v1089_v32  ;;  %v2906_v51 = vadd.f32 %v1067_v40, %v2826_v61  ;;  %v572_v61 = vld [vmem:[%s2618_s20 + $0x68] sm:$0xff]  ;;  %1874 = vpow2.f32 %v647_v15  ;;  %v900_v36 = vsub.f32 0.0, %v537_v18 }
 0x122   : > { %v1859_v59 = vpop.eup %1858  ;;  %v2929_v6 = vmul.f32 0.5, %v572_v61  ;;  %v2938_v38 = vmul.f32 0.5, %v589_v22  ;;  %v2940_v48 = vmul.f32 0.5, %v590_v30  ;;  %v2948_v61 = vld [vmem:[%s2612_s25 + $0xe0] sm:$0xff] }
 0x123   : > { %v2910_v1 = vpop.eup %1860  ;;  %v1069_v3 = vmul.f32 %v1859_v59, %v979_v11  ;;  %v2915_v54 = vadd.f32 %v1523_v33, %v1151_v39  ;;  %v963_v33 = vadd.f32 1.0, %v931_v17  ;;  %v573_v59 = vld [vmem:[%s2618_s20 + $0x70] sm:$0xff]  ;;  %v574_v39 = vld [vmem:[%s2618_s20 + $0x78] sm:$0xff]  ;;  %s3249_s20 = sld [smem:[#allocation24_spill]] }
 0x124   : > { %v746_v4 = vmul.f32 %v2910_v1, %v714_v25  ;;  %v1863_v13 = vpop.eup %1862  ;;  %v649_v0 = vmul.f32 1.442695, %v2929_v6  ;;  %v715_v25 = vld [vmem:[%s2620_s11 + $0xe0] sm:$0xff]  ;;  %v683_v49 = vmul.f32 1.442695, %v2938_v38  ;;  %v2960_v15 = vmul.f32 0.5, %v574_v39 }
 0x125   : > { %v2923_v56 = vadd.f32 %v1069_v3, %v2828_v62  ;;  %v1865_v62 = vpop.eup %1864  ;;  %v729_v58 = vmul.f32 %v1863_v13, %v697_v10  ;;  %v868_v23 = vmul.f32 %v1863_v13, %v1863_v13  ;;  %v716_v3 = vld [vmem:[%s2620_s11 + $0xe8] sm:$0xff]  ;;  %v685_v60 = vmul.f32 1.442695, %v2940_v48 }
 0x126   : > { %v778_v63 = vadd.f32 %v746_v4, %v2913_v43  ;;  %v730_v21 = vmul.f32 %v1865_v62, %v698_v34  ;;  %v869_v45 = vmul.f32 %v1865_v62, %v1865_v62  ;;  %v1867_v8 = vpop.eup %1866  ;;  %1876 = vpow2.f32 %v649_v0  ;;  %v2955_v34 = vld [vmem:[%s2612_s25 + $0xe8] sm:$0xff] }
 0x127   : > { %v761_v32 = vadd.f32 %v729_v58, %v537_v18  ;;  %v996_v11 = vmul.f32 2.0, %v868_v23  ;;  %v1869_v41 = vpop.eup %1868  ;;  %v1035_v55 = vmul.f32 %v1867_v8, %v962_v19  ;;  %v932_v10 = vmul.f32 %v900_v36, %v900_v36  ;;  %v699_v23 = vld [vmem:[%s2620_s11 + $0x60] sm:$0xff] }
 0x128   : > { %v1615_v14 = vpack.c.bf16 %v778_v63, %v777_v24  ;;  %v762_v35 = vadd.f32 %v730_v21, %v538_v31  ;;  %v997_v40 = vmul.f32 2.0, %v869_v45  ;;  %v2945_v4 = vpop.eup %1870  ;;  %v901_v24 = vsub.f32 0.0, %v538_v31  ;;  %v700_v45 = vld [vmem:[%s2620_s11 + $0x68] sm:$0xff] }
 0x129   : > { %1878 = vrcp.f32 %v996_v11  ;;  %v2952_v63 = vpop.eup %1872  ;;  %v747_v13 = vmul.f32 %v2945_v4, %v715_v25  ;;  %v1037_v62 = vmul.f32 %v1869_v41, %v963_v33  ;;  %v1090_v18 = vadd.f32 %v1035_v55, %v2835_v27  ;;  %v539_v11 = vld [vmem:[%s2612_s25 + $0x60] sm:$0xff]  ;;  %v540_v41 = vld [vmem:[%s2612_s25 + $0x68] sm:$0xff]  ;;  %p1548_p9 = scmp.ne.s32.totalorder %s3249_s20, 1 }
 0x12a   : > { %1616 = vmatprep.subr.bf16.mxu0 %v1615_v14  ;;  %v1617_v47 = vpack.c.bf16 %v762_v35, %v761_v32  ;;  %1880 = vrcp.f32 %v997_v40  ;;  %v2958_v14 = vmul.f32 0.5, %v573_v59  ;;  %v748_v17 = vmul.f32 %v2952_v63, %v716_v3 }
 0x12b   : > { %1882 = vpow2.f32 %v683_v49  ;;  %v779_v58 = vadd.f32 %v747_v13, %v2948_v61  ;;  %v933_v19 = vmul.f32 %v901_v24, %v901_v24  ;;  %v653_v22 = vmul.f32 1.442695, %v2960_v15  ;;  %v1875_v30 = vpop.eup %1874 }
 0x12c   : > { %1618 = vmatpush3.bf16.msra.mxu0 %v1617_v47  ;;  %1884 = vpow2.f32 %v685_v60  ;;  %v651_v0 = vmul.f32 1.442695, %v2958_v14  ;;  %v780_v21 = vadd.f32 %v748_v17, %v2955_v34  ;;  %v964_v8 = vadd.f32 1.0, %v932_v10 }
 0x12d   : > { %v731_v27 = vmul.f32 %v1875_v30, %v699_v23  ;;  %v870_v35 = vmul.f32 %v1875_v30, %v1875_v30  ;;  %v1091_v36 = vadd.f32 %v1037_v62, %v2838_v37  ;;  %v1524_v40 = vadd.f32 -0.5, %v1090_v18  ;;  %v717_v37 = vld [vmem:[%s2620_s11 + $0xf0] sm:$0xff]  ;;  %v2985_v30 = vld [vmem:[%s2612_s25 + $0xf8] sm:$0xff] }
 0x12e   : > { %1886 = vpow2.f32 %v651_v0  ;;  %v1619_v32 = vpack.c.bf16 %v780_v21, %v779_v58  ;;  %v965_v39 = vadd.f32 1.0, %v933_v19  ;;  %v902_v60 = vsub.f32 0.0, %v539_v11  ;;  %v718_v58 = vld [vmem:[%s2620_s11 + $0xf8] sm:$0xff]  ;;  %v2979_v19 = vld [vmem:[%s2612_s25 + $0xf0] sm:$0xff] }
 0x12f   : > { %1888 = vpow2.f32 %v653_v22  ;;  %v763_v55 = vadd.f32 %v731_v27, %v539_v11  ;;  %v998_v47 = vmul.f32 2.0, %v870_v35  ;;  %v903_v13 = vsub.f32 0.0, %v540_v41  ;;  %v702_v11 = vld [vmem:[%s2620_s11 + $0x78] sm:$0xff] }
 0x130   : > { %v1877_v31 = vpop.eup %1876  ;;  %1620 = vmatprep.subr.bf16.mxu0 %v1619_v32  ;;  %v1525_v62 = vadd.f32 -0.5, %v1091_v36  ;;  %v1153_v17 = vadd.f32 %v1524_v40, %v2915_v54  ;;  %v934_v22 = vmul.f32 %v902_v60, %v902_v60  ;;  %vm1221_vm2 = vcmask (!%p1548_p9), 1040384  }
 0x131   : > { %v732_v33 = vmul.f32 %v1877_v31, %v700_v45  ;;  %v871_v25 = vmul.f32 %v1877_v31, %v1877_v31  ;;  %1890 = vrcp.f32 %v998_v47  ;;  %v935_v31 = vmul.f32 %v903_v13, %v903_v13  ;;  %v542_v47 = vld [vmem:[%s2612_s25 + $0x78] sm:$0xff] }
 0x132   : > { %v1154_v35 = vadd.f32 %v1525_v62, %v1153_v17 }
 0x133   : > { %v1879_v59 = vpop.eup %1878  ;;  %v764_v49 = vadd.f32 %v732_v33, %v540_v41  ;;  %v999_v10 = vmul.f32 2.0, %v871_v25  ;;  %v541_v33 = vld [vmem:[%s2612_s25 + $0x70] sm:$0xff]  ;;  %s3248_s25 = smov %s3247_s26 }
 0x134   : > { %v1881_v3 = vpop.eup %1880  ;;  %v1039_v24 = vmul.f32 %v1879_v59, %v964_v8  ;;  %v701_v8 = vld [vmem:[%s2620_s11 + $0x70] sm:$0xff]  ;;  %v904_v62 = vsub.f32 0.0, %v541_v33 }
 0x135   : > { %v1621_v18 = vpack.c.bf16 %v764_v49, %v763_v55  ;;  %1892 = vrcp.f32 %v999_v10  ;;  %v2976_v23 = vpop.eup %1882  ;;  %v1041_v0 = vmul.f32 %v1881_v3, %v965_v39  ;;  %v966_v55 = vadd.f32 1.0, %v934_v22 }
 0x136   : > { %v2981_v21 = vpop.eup %1884  ;;  %v1092_v45 = vadd.f32 %v1039_v24, %v2880_v9  ;;  %v749_v54 = vmul.f32 %v2976_v23, %v717_v37  ;;  %v967_v49 = vadd.f32 1.0, %v935_v31 }
 0x137   : > { %1622 = vmatpush3.bf16.msra.mxu0 %v1621_v18  ;;  %v750_v32 = vmul.f32 %v2981_v21, %v718_v58  ;;  %v1093_v41 = vadd.f32 %v1041_v0, %v2882_v2  ;;  %v905_v58 = vsub.f32 0.0, %v542_v47 }
 0x138   : > { %v1887_v27 = vpop.eup %1886  ;;  %v781_v36 = vadd.f32 %v749_v54, %v2979_v19  ;;  %v1526_v39 = vadd.f32 -0.5, %v1092_v45 }
 0x139   : > { %v1889_v40 = vpop.eup %1888  ;;  %v782_v9 = vadd.f32 %v750_v32, %v2985_v30  ;;  %v733_v25 = vmul.f32 %v1887_v27, %v701_v8  ;;  %v872_v59 = vmul.f32 %v1887_v27, %v1887_v27  ;;  %v1527_v2 = vadd.f32 -0.5, %v1093_v41 }
 0x13a   : > { %v734_v3 = vmul.f32 %v1889_v40, %v702_v11  ;;  %v873_v24 = vmul.f32 %v1889_v40, %v1889_v40  ;;  %v1155_v54 = vadd.f32 %v1526_v39, %v1154_v35  ;;  %v936_v32 = vmul.f32 %v904_v62, %v904_v62  ;;  %v784_v11 = vld [vmem:[%s3248_s25] sm:$0xff] }
 0x13b   : > { %v1623_v60 = vpack.c.bf16 %v782_v9, %v781_v36  ;;  %v765_v10 = vadd.f32 %v733_v25, %v541_v33  ;;  %v1000_v13 = vmul.f32 2.0, %v872_v59  ;;  %v1891_v18 = vpop.eup %1890  ;;  %v937_v27 = vmul.f32 %v905_v58, %v905_v58 }
 0x13c   : > { %v766_v37 = vadd.f32 %v734_v3, %v542_v47  ;;  %v1001_v17 = vmul.f32 2.0, %v873_v24  ;;  %v1043_v45 = vmul.f32 %v1891_v18, %v966_v55  ;;  %v1156_v36 = vadd.f32 %v1527_v2, %v1155_v54 }
 0x13d   : > { %1624 = vmatprep.subr.bf16.mxu0 %v1623_v60  ;;  %1894 = vrcp.f32 %v1000_v13  ;;  %v968_v9 = vadd.f32 1.0, %v936_v32  ;;  %v884_v35 = vmul.f32 %v2891_v28, %v2891_v28  ;;  %v969_v33 = vadd.f32 1.0, %v937_v27 }
 0x13e   : > { %v1625_v22 = vpack.c.bf16 %v766_v37, %v765_v10  ;;  %1896 = vrcp.f32 %v1001_v17  ;;  %v1094_v31 = vadd.f32 %v1043_v45, %v2920_v57  ;;  %v885_v57 = vmul.f32 %v2910_v1, %v2910_v1 }
 0x13f   : > { %v1893_v0 = vpop.eup %1892  ;;  %v1012_v3 = vmul.f32 2.0, %v884_v35  ;;  %v887_v13 = vmul.f32 %v2952_v63, %v2952_v63  ;;  %v888_v1 = vmul.f32 %v2976_v23, %v2976_v23  ;;  %v1532_v18 = vadd.f32 -0.5, %v2772_v50 }
 0x140   : > { %v1045_v8 = vmul.f32 %v1893_v0, %v967_v49  ;;  %1626 = vmatpush3.bf16.msra.mxu0 %v1625_v22  ;;  %v1528_v41 = vadd.f32 -0.5, %v1094_v31  ;;  %v1013_v10 = vmul.f32 2.0, %v885_v57  ;;  %v1533_v58 = vadd.f32 -0.5, %v2778_v53 }
 0x141   : > { %1898 = vrcp.f32 %v1012_v3  ;;  %v917_v63 = vsub.f32 0.0, %v2913_v43  ;;  %v1016_v54 = vmul.f32 2.0, %v888_v1  ;;  %v1534_v23 = vadd.f32 -0.5, %v2795_v16 }
 0x142   : > { %v1095_v40 = vadd.f32 %v1045_v8, %v2929_v6  ;;  %v1157_v59 = vadd.f32 %v1528_v41, %v1156_v36  ;;  %v886_v6 = vmul.f32 %v2945_v4, %v2945_v4  ;;  %v916_v4 = vsub.f32 0.0, %v2899_v44 }
 0x143   : > { %851 = vmatmul.mubr.f32.vlgmr.msra.gmra.mrb[0].mxu0 %v784_v11  ;;  %1900 = vrcp.f32 %v1013_v10  ;;  %v918_v50 = vsub.f32 0.0, %v2948_v61  ;;  %v1535_v8 = vadd.f32 -0.5, %v2800_v20  ;;  %v949_v31 = vmul.f32 %v917_v63, %v917_v63 }
 0x144   : > { %v1529_v25 = vadd.f32 -0.5, %v1095_v40  ;;  %v1014_v17 = vmul.f32 2.0, %v886_v6  ;;  %v948_v45 = vmul.f32 %v916_v4, %v916_v4  ;;  %v1536_v53 = vadd.f32 -0.5, %v2812_v7 }
 0x145   : > { %v950_v11 = vmul.f32 %v918_v50, %v918_v50  ;;  %v920_v27 = vsub.f32 0.0, %v2979_v19  ;;  %v1537_v61 = vadd.f32 -0.5, %v2815_v52  ;;  %v981_v40 = vadd.f32 1.0, %v949_v31 }
 0x146   : > { %v1158_v49 = vadd.f32 %v1529_v25, %v1157_v59  ;;  %1902 = vrcp.f32 %v1014_v17  ;;  %v980_v43 = vadd.f32 1.0, %v948_v45  ;;  %v921_v20 = vsub.f32 0.0, %v2985_v30 }
 0x147   : > { %v1895_v39 = vpop.eup %1894  ;;  %v982_v7 = vadd.f32 1.0, %v950_v11  ;;  %v952_v25 = vmul.f32 %v920_v27, %v920_v27  ;;  %v1539_v19 = vadd.f32 -0.5, %v2867_v42  ;;  %v1541_v10 = vadd.f32 -0.5, %v2923_v56 }
 0x148   : > { %v1897_v55 = vpop.eup %1896  ;;  %v1047_v47 = vmul.f32 %v1895_v39, %v968_v9 }
 0x149   : > { %v1049_v24 = vmul.f32 %v1897_v55, %v969_v33  ;;  %v984_v6 = vadd.f32 1.0, %v952_v25 }
 0x14a   : > { %v1096_v60 = vadd.f32 %v1047_v47, %v2958_v14  ;;  %v889_v14 = vmul.f32 %v2981_v21, %v2981_v21  ;;  %v919_v21 = vsub.f32 0.0, %v2955_v34  ;;  %v1538_v34 = vadd.f32 -0.5, %v2863_v12 }
 0x14b   : > { %v1097_v28 = vadd.f32 %v1049_v24, %v2960_v15  ;;  %v1015_v15 = vmul.f32 2.0, %v887_v13  ;;  %v1899_v36 = vpop.eup %1898  ;;  %v953_v47 = vmul.f32 %v921_v20, %v921_v20  ;;  %v1540_v24 = vadd.f32 -0.5, %v2906_v51 }
 0x14c   : > { %v1530_v37 = vadd.f32 -0.5, %v1096_v60  ;;  %v1017_v44 = vmul.f32 2.0, %v889_v14  ;;  %v951_v41 = vmul.f32 %v919_v21, %v919_v21  ;;  %v1071_v33 = vmul.f32 %v1899_v36, %v980_v43  ;;  %v783_v43 = vld [vmem:[#allocation2] sm:$0xff] }
 0x14d   : > { %v1531_v62 = vadd.f32 -0.5, %v1097_v28  ;;  %1904 = vrcp.f32 %v1015_v15  ;;  %v1901_v35 = vpop.eup %1900  ;;  %v985_v28 = vadd.f32 1.0, %v953_v47 }
 0x14e   : > { %v1159_v2 = vadd.f32 %v1530_v37, %v1158_v49  ;;  %1906 = vrcp.f32 %v1016_v54  ;;  %v1073_v57 = vmul.f32 %v1901_v35, %v981_v40  ;;  %v983_v55 = vadd.f32 1.0, %v951_v41  ;;  %v1196_v40 = vld [vmem:[%s516_s8] sm:$0x1] (!%p1548_p9) }
 0x14f   : > { %1908 = vrcp.f32 %v1017_v44  ;;  %v1108_v30 = vadd.f32 %v1071_v33, %v2846_v46  ;;  %v1197_v41 = vmul.f32 (!%p1548_p9), 0.5, %v1196_v40  ;;  %v1195_v35 = vld [vmem:[%s513_s7] sm:$0x1] (!%p1548_p9) }
 0x150   : > { %v1160_v0 = vadd.f32 %v1531_v62, %v1159_v2  ;;  %v1903_v39 = vpop.eup %1902  ;;  %v1109_v37 = vadd.f32 %v1073_v57, %v2852_v5 }
 0x151   : > { %v1075_v49 = vmul.f32 %v1903_v39, %v982_v7  ;;  %v1213_v7 = vsub.f32 (!%p1548_p9), 0.0, %v1195_v35 }
 0x152   : > { %v1161_v22 = vadd.f32 %v1532_v18, %v1160_v0  ;;  %v1542_v18 = vadd.f32 -0.5, %v1108_v30  ;;  %v1543_v14 = vadd.f32 -0.5, %v1109_v37 }
 0x153   : > { %v1110_v17 = vadd.f32 %v1075_v49, %v2889_v26  ;;  %v1214_v25 = vmul.f32 (!%p1548_p9), %v1213_v7, %v1213_v7 }
 0x154   : > { %v1162_v32 = vadd.f32 %v1533_v58, %v1161_v22 }
 0x155   : > { %v1544_v58 = vadd.f32 -0.5, %v1110_v17 }
 0x156   : > { %v1163_v16 = vadd.f32 %v1534_v23, %v1162_v32 }
 0x157   : > { %v1905_v3 = vpop.eup %1904 }
 0x158   : > { %v1164_v9 = vadd.f32 %v1535_v8, %v1163_v16  ;;  %v1907_v12 = vpop.eup %1906  ;;  %v1077_v13 = vmul.f32 %v1905_v3, %v983_v55  ;;  %v1186_v16 = vld [vmem:[#allocation3] sm:$0x1]  ;;  %v1205_v3 = vlaneseq (!%p1548_p9) }
 0x159   : > { %v1909_v62 = vpop.eup %1908  ;;  %v1079_v1 = vmul.f32 %v1907_v12, %v984_v6 }
 0x15a   : > { %v1165_v59 = vadd.f32 %v1536_v53, %v1164_v9  ;;  %v1081_v51 = vmul.f32 %v1909_v62, %v985_v28  ;;  %v1111_v2 = vadd.f32 %v1077_v13, %v2894_v29  ;;  %v1198_v9 = vmul.f32 (!%p1548_p9), 1.442695, %v1197_v41 }
 0x15b   : > { %v1112_v15 = vadd.f32 %v1079_v1, %v2938_v38  ;;  %v1206_v6 = vshrl.u32 (!%p1548_p9), %v1205_v3, 7  ;;  %v2231_v28 = vmov (!%p1548_p9), 0  }
 0x15c   : > { %v1166_v52 = vadd.f32 %v1537_v61, %v1165_v59  ;;  %v1113_v63 = vadd.f32 %v1081_v51, %v2940_v48  ;;  %v1545_v0 = vadd.f32 -0.5, %v1111_v2  ;;  %1911 = vpow2.f32 (!%p1548_p9), %v1198_v9  ;;  %1910 = vset.pattern.permute.xlu0 (!%p1548_p9), %v2231_v28 }
 0x15d   : > { %v1546_v54 = vadd.f32 -0.5, %v1112_v15  ;;  %v1215_v59 = vadd.f32 (!%p1548_p9), 1.0, %v1214_v25  ;;  %v1207_v30 = vsub.s32 (!%p1548_p9), 0, %v1206_v6 }
 0x15e   : > { %v1167_v60 = vadd.f32 %v1538_v34, %v1166_v52  ;;  %v1547_v45 = vadd.f32 -0.5, %v1113_v63  ;;  %v1200_v52 = vld [vmem:[%s519_s21] sm:$0x1] (!%p1548_p9) }
 0x160   : > { %v1168_v42 = vadd.f32 %v1539_v19, %v1167_v60 }
 0x162   : > { %v1169_v4 = vadd.f32 %v1540_v24, %v1168_v42 }
 0x164   : > { %v1170_v46 = vadd.f32 %v1541_v10, %v1169_v4 }
 0x166   : > { %v1171_v56 = vadd.f32 %v1542_v18, %v1170_v46  ;;  %v1912_v20 = vpop.eup (!%p1548_p9), %1911 }
 0x167   : > { %v1212_v34 = vmul.f32 (!%p1548_p9), %v1912_v20, %v1912_v20  ;;  %v1201_v24 = vmul.f32 (!%p1548_p9), %v1912_v20, %v1200_v52 }
 0x168   : > { %v1172_v5 = vadd.f32 %v1543_v14, %v1171_v56 }
 0x169   : > { %v1216_v33 = vmul.f32 (!%p1548_p9), 2.0, %v1212_v34  ;;  %v1202_v49 = vadd.f32 (!%p1548_p9), %v1201_v24, %v1195_v35 }
 0x16a   : > { %v1173_v23 = vadd.f32 %v1544_v58, %v1172_v5 }
 0x16b   : > { %1913 = vrcp.f32 (!%p1548_p9), %v1216_v33  ;;  %v1208_v12 = vrot.slane (!%p1548_p9), %v1202_v49, %v1207_v30 }
 0x16c   : > { %v1174_v50 = vadd.f32 %v1545_v0, %v1173_v23 }
 0x16e   : > { %v1175_v26 = vadd.f32 %v1546_v54, %v1174_v50 }
 0x170   : > { %v1176_v22 = vadd.f32 %v1547_v45, %v1175_v26 }
 0x172   : > { %1177 = vadd.xlane.f32.xlu0 %v1176_v22 }
 0x175   : > { %v1914_v39 = vpop.eup (!%p1548_p9), %1913 }
 0x176   : > { %v1218_v19 = vmul.f32 (!%p1548_p9), %v1914_v39, %v1215_v59 }
 0x178   : > { %v1219_v57 = vadd.f32 (!%p1548_p9), %v1218_v19, %v1197_v41 }
 0x17a   : > { %v1549_v55 = vadd.f32 (!%p1548_p9), -0.5, %v1219_v57 }
 0x17c   : > { %v1222_v47 = vsel (!%p1548_p9), %vm1221_vm2, %v1549_v55, 0.0 }
 0x17d   : > { %1223 = vadd.xlane.f32.xlu0 (!%p1548_p9), %v1222_v47 }
 0x1ff   : > { %v1178_v44 = vpop.xlane.xlu0 %1177 }
 0x200   : > { %v1179_v8 = vrot.slane %v1178_v44, 4 }
 0x202   : > { %v1180_v29 = vadd.f32 %v1179_v8, %v1178_v44 }
 0x204   : > { %v1181_v31 = vrot.slane %v1180_v29, 2 }
 0x206   : > { %v1182_v21 = vadd.f32 %v1181_v31, %v1180_v29 }
 0x208   : > { %v1183_v32 = vrot.slane %v1182_v21, 1 }
 0x20a   : > { %v1184_v38 = vadd.f32 %v1183_v32, %v1182_v21  ;;  %v1224_v13 = vpop.xlane.xlu0 (!%p1548_p9), %1223 }
 0x20b   : > { %v1225_v37 = vrot.slane (!%p1548_p9), %v1224_v13, 4 }
 0x20c   : > { %1627 = vpush %v1184_v38 }
 0x20d   : > { %v1226_v42 = vadd.f32 (!%p1548_p9), %v1225_v37, %v1224_v13 }
 0x20f   : > { %v1227_v62 = vrot.slane (!%p1548_p9), %v1226_v42, 2 }
 0x211   : > { %v1228_v1 = vadd.f32 (!%p1548_p9), %v1227_v62, %v1226_v42 }
 0x213   : > { %v1229_v17 = vrot.slane (!%p1548_p9), %v1228_v1, 1 }
 0x215   : > { %v1230_v18 = vadd.f32 (!%p1548_p9), %v1229_v17, %v1228_v1 }
 0x216   : > { %v1592_v53 = vpop.f32.mrb[0].mxu0 }
 0x217   : > { %v1593_v48 = vpop.f32.mrb[1].mxu0  ;;  %1629 = vpush (!%p1548_p9), %v1230_v18 }
 0x218   : > { %v1594_v11 = vadd.f32 %v1593_v48, %v1592_v53 }
 0x21a   : > { %v856_v27 = vadd.f32 %v1594_v11, %v783_v43 }
 0x21c   : > { %857 = vst [vmem:[#allocation2] sm:$0xff] %v856_v27 }
 0x223   : > { %v1203_v60 = vld [vmem:[#allocation2] sm:$0xff] (!%p1548_p9) }
 0x224   : > { %v1210_v10 = vadd.f32 (!%p1548_p9), %v1208_v12, %v1203_v60 }
 0x226   : > { %1211 = vst [vmem:[%s2646_s5] sm:$0xff] (!%p1548_p9), %v1210_v10 }
 0x23b   : > { %1194 = sbr.rel (%p1548_p9) target bundleno = 719 (0x2cf), region = 72 }
 0x23d   : > { %s1628_s24 = spop %1627 }
 0x23e   : > { %v1187_v36 = vstv %s1628_s24 }
 0x23f   : > { %v1188_v61 = vadd.f32 %v1187_v36, %v1186_v16 }
 0x241   : > { %1190 = vst.msk [vmem:[#allocation3] sm:$0x1] %vm1189_vm1, %v1188_v61 }
 0x248   : > { %v1232_v4 = vld [vmem:[#allocation3] sm:$0x1]  ;;  %s1630_s14 = spop %1629 }
 0x249   : > { %v1233_v51 = vstv %s1630_s14 }
 0x24a   : > { %v1234_v2 = vadd.f32 %v1233_v51, %v1232_v4 }
 0x24c   : > { %v1239_v14 = vrot.slane %v1234_v2, %v1207_v30 }
 0x24e   : > { %1241 = vperm.xlu0 %1910, %v1239_v14  }
 0x2cd   : > { %v1242_v46 = vpop.permute.xlu0 %1241 }
 0x2ce   : > { %1244 = vst [vmem:[%s2648_s30] sm:$0xff] %v1242_v46 }
 0x2cf PF: > { %s3253_s7 = sld [smem:[#allocation25_spill]]  ;;  %s3254_s21 = sld [smem:[#allocation38_spill]] }
 0x2d0   : > { %s1264_s25 = sshll.u32 %s2646_s5, 4  ;;  %s1246_s24 = scalar_lea.sflag [#allocation6], %s2627_s17  ;;  %s1265_s25 = int_to_ptr.vmem [resolvable:$true] %s1264_s25 }
 0x2d1   : > { %s2035_s20 = scalar_lea.vmem %s1265_s25, 128  ;;  %p3255_p11 = scmp.ne.s32.totalorder %s3227_s1, 0 }
 0x2d2   : > { %p2036_p1 = scmp.ne.s32.totalorder %s1265_s25, %s2035_s20  ;;  %s2232_s11 = smov [#allocation12]  }
 0x2d3   : > { %s2039_s23 = sshll.u32 %s2232_s11, 4  ;;  %s2040_s23 = int_to_ptr.vmem [resolvable:$false] %s2039_s23 }
 0x2d4   : > { %p2037_p4 = pnand %p2036_p1, %p3255_p11  ;;  %s2041_s19 = scalar_lea.vmem %s2040_s23, 256 }
 0x2d5   : > { %s1552_s22 = sshll.u32 %s3253_s7, 7  ;;  %p2042_p0 = scmp.lt.s32.totalorder %s1265_s25, %s2040_s23 }
 0x2d6   : > { %s3060_s26 = scalar_lea.hbm %s3254_s21, %s1552_s22  ;;  %p2038_p2 = pneg %p2037_p4 }
 0x2d7   : > { %p2043_p3 = scmp.lt.s32.totalorder %s2041_s19, %s2035_s20 }
 0x2d9   : > { %p2044_p8 = por %p2043_p3, %p2042_p0 }
 0x2db   : > { %p2045_p13 = pnand %p2044_p8, %p2038_p2 }
 0x2dd   : > { %2048 = shalt.err (!%p2045_p13)
}
 0x2de   : > { %s2049_s5 = scalar_lea.hbm %s3060_s26, 128  ;;  %s2053_s6 = scalar_lea.hbm %s3254_s21, 256 }
 0x2df   : > { %p2050_p7 = scmp.ne.s32.totalorder %s3060_s26, %s2049_s5  ;;  %p2054_p6 = scmp.lt.u32.totalorder %s3060_s26, %s3254_s21 }
 0x2e0   : > { %p2055_p10 = scmp.lt.u32.totalorder %s2053_s6, %s2049_s5  ;;  %p2057_p1 = scmp.lt.u32.totalorder %s2049_s5, %s3060_s26 }
 0x2e1   : > { %p2051_p12 = pnand %p2050_p7, %p3255_p11 }
 0x2e2   : > { %p2056_p9 = por %p2055_p10, %p2054_p6 }
 0x2e3   : > { %p2052_p5 = pneg %p2051_p12 }
 0x2e4   : > { %p2058_p4 = por %p2057_p1, %p2056_p9 }
 0x2e6   : > { %p2059_p2 = pnand %p2058_p4, %p2052_p5 }
 0x2e8   : > { %2062 = shalt.err (!%p2059_p2)
}
 0x2e9   : > { %1639 = dma.vmem_to_hbm [thread:$0]  (%p3255_p11), %s1265_s25, 128, %s3060_s26, %s1246_s24  }
 0x2ea   : > { %s3256_s29 = sld [smem:[#allocation39_spill]]  ;;  %s1277_s11 = sshll.u32 %s2648_s30, 4  ;;  %s1278_s11 = int_to_ptr.vmem [resolvable:$true] %s1277_s11 }
 0x2eb   : > { %s1251_s23 = scalar_lea.sflag [#allocation14], %s2627_s17  ;;  %s2063_s19 = scalar_lea.vmem %s1278_s11, 128 }
 0x2ec   : > { %p2064_p0 = scmp.ne.s32.totalorder %s1278_s11, %s2063_s19  ;;  %s2233_s5 = smov [#allocation13]  }
 0x2ed   : > { %s2067_s13 = sshll.u32 %s2233_s5, 4  ;;  %s2068_s13 = int_to_ptr.vmem [resolvable:$false] %s2067_s13 }
 0x2ee   : > { %p2065_p3 = pnand %p2064_p0, %p3255_p11  ;;  %s2069_s16 = scalar_lea.vmem %s2068_s13, 256 }
 0x2ef   : > { %p2070_p13 = scmp.lt.s32.totalorder %s1278_s11, %s2068_s13  ;;  %p2071_p7 = scmp.lt.s32.totalorder %s2069_s16, %s2063_s19 }
 0x2f0   : > { %s3257_s20 = smov %s3256_s29  ;;  %s3086_s9 = scalar_lea.hbm %s3256_s29, %s1552_s22 }
 0x2f1   : > { %p2066_p8 = pneg %p2065_p3  ;;  %p2072_p12 = por %p2071_p7, %p2070_p13 }
 0x2f3   : > { %p2073_p5 = pnand %p2072_p12, %p2066_p8 }
 0x2f5   : > { %2076 = shalt.err (!%p2073_p5)
}
 0x2f6   : > { %s2077_s17 = scalar_lea.hbm %s3086_s9, 128  ;;  %s2081_s22 = scalar_lea.hbm %s3257_s20, 256 }
 0x2f7   : > { %p2078_p6 = scmp.ne.s32.totalorder %s3086_s9, %s2077_s17  ;;  %p2082_p1 = scmp.lt.u32.totalorder %s3086_s9, %s3257_s20 }
 0x2f8   : > { %p2083_p4 = scmp.lt.u32.totalorder %s2081_s22, %s2077_s17  ;;  %p2085_p0 = scmp.lt.u32.totalorder %s2077_s17, %s3086_s9 }
 0x2f9   : > { %p2079_p10 = pnand %p2078_p6, %p3255_p11 }
 0x2fa   : > { %p2084_p2 = por %p2083_p4, %p2082_p1 }
 0x2fb   : > { %p2080_p9 = pneg %p2079_p10 }
 0x2fc   : > { %p2086_p3 = por %p2085_p0, %p2084_p2 }
 0x2fe   : > { %p2087_p8 = pnand %p2086_p3, %p2080_p9 }
 0x300   : > { %2090 = shalt.err (!%p2087_p8)
}
 0x301   : > { %1640 = dma.vmem_to_hbm [thread:$0]  (%p3255_p11), %s1278_s11, 128, %s3086_s9, %s1251_s23  }
 0x302 PF: > { %p1664_p13 = scmp.ge.s32.totalorder %s2221_s18, 2  ;;  %s1289_s24 = sand.u32 1, %s2169_s27  }
 0x303   : > { %p3258_p7 = scmp.ne.s32.totalorder %s3228_s15, 0  ;;  %s1290_s6 = scalar_lea.sflag [#allocation6], %s1289_s24 }
 0x305   : > { %p1657_p12 = pnand %p1664_p13, %p3258_p7 }
 0x307   : > { %2160 = dma.done.wait (!%p1657_p12), %s1290_s6, 128  }
 0x308   : > { %2162 = vsyncadd (!%p1657_p12), %s1290_s6, 4294967168  ;;  %s1299_s4 = scalar_lea.sflag [#allocation14], %s1289_s24 }
 0x309   : > { %2164 = dma.done.wait (!%p1657_p12), %s1299_s4, 128  }
 0x30a   : > { %2166 = vsyncadd (!%p1657_p12), %s1299_s4, 4294967168  ;;  %s34_s18 = sadd.s32 1, %s2221_s18   ;;  %s3260_s12 = sld [smem:[#allocation20_spill]] }
 0x30b   : > { %p3112_p5 = scmp.ge.s32.totalorder %s34_s18, 6   ;;  %s3261_s29 = sld [smem:[#allocation32_spill]] }
 0x30c   : > { %s3262_s30 = sld [smem:[#allocation21_spill]]  ;;  %s3263_s8 = sld [smem:[#allocation33_spill]] }
 0x30d   : > { %s3264_s11 = sld [smem:[#allocation22_spill]]  ;;  %s3265_s15 = sld [smem:[#allocation23_spill]] }
 0x30e   : > { %s3266_s13 = sld [smem:[#allocation31_spill]]  ;;  %s3267_s14 = sld [smem:[#allocation26_spill]] }
 0x30f   : > { %s3268_s23 = sld [smem:[#allocation27_spill]]  ;;  %s3269_s16 = sld [smem:[#allocation28_spill]] }
 0x310   : > { %s3270_s17 = sld [smem:[#allocation30_spill]]  ;;  %s3271_s27 = smov %s2173_s28 }
 0x311   : > { %s3272_s28 = smov %s3260_s12  ;;  %s3273_s9 = smov %s2189_s10 }
 0x312   : > { %s3274_s10 = smov %s3263_s8  ;;  %33 = sbr.rel (!%p3112_p5) target bundleno = 23 (0x17), region = 164 }
 0x313   : > { %s3275_s12 = smov %s3265_s15 }
 0x315   : > { %s3276_s15 = smov %s3268_s23 }
 0x319   :  { %1304 = vsyncpa [#allocation5], 1 }
 0x31a   :  { %1306 = vsyncpa [#allocation5 + $0x1], 1 }
 0x31b   :  { %1307 = vsyncpa [#allocation8], 1 }
 0x31c   :  { %1309 = vsyncpa [#allocation8 + $0x1], 1 }
 0x31d   :  { %1310 = vsyncpa [#allocation11], 1 }
 0x31e   :  { %1312 = vsyncpa [#allocation11 + $0x1], 1 }
 0x31f   :  { %1313 = vsyncpa [#allocation6], 1 }
 0x320   :  { %1315 = vsyncpa [#allocation6 + $0x1], 1 }
 0x321   :  { %1316 = vsyncpa [#allocation14], 1 }
 0x322   :  { %1318 = vsyncpa [#allocation14 + $0x1], 1 }

</bundles_post_ra>
